<compile_context>
chip_gen: v7x
topology: tpu7x:2x2x1
jax: 0.10.0
libtpu: 0.0.40
codegen_flags: <defaults>
</compile_context>

<pallas_src>
import jax
import jax.numpy as jnp
from jax.experimental import pallas as pl
from jax.experimental.pallas import tpu as pltpu

_SUBLANES = 8
_MAX_TILE_BYTES = 8 * 1024 * 1024       # cap per-z-tile at 8 MiB (safe on v7x's 64 MiB VMEM)
_FAST_PATH_BYTES = 32 * 1024            # below this, plain XLA fusion beats a Pallas launch
_DEFAULT_VMEM_CAPACITY = 64 * 1024 * 1024  # conservative (v7x per-TC) if query unavailable


def _round_up(x, m):
    return ((x + m - 1) // m) * m


def _vmem_limit_bytes():
    """~75% of physical VMEM, capped at 96 MiB (=> 48 MiB on v7x, 96 MiB on v5e/v6e)."""
    try:
        cap = int(pltpu.get_tpu_info().vmem_capacity_bytes)
    except Exception:
        cap = _DEFAULT_VMEM_CAPACITY
    cap = max(cap, 16 * 1024 * 1024)
    return min((cap * 3) // 4, 96 * 1024 * 1024)


def _pick_batch_tile(n, d, itemsize, vmem_limit_bytes):
    """Largest 8-aligned batch tile s.t. ~4 pipeline buffers (+headroom) fit the budget,
    clamped so the grid has >=2 steps when the batch allows (megacore sharding on v7x)."""
    align = _SUBLANES
    row_bytes = max(d * itemsize, 1)
    tile_budget = min(vmem_limit_bytes // 5, _MAX_TILE_BYTES)   # 2x in + 2x out + headroom
    tile = max(tile_budget // row_bytes, align)
    if n > 2 * align:
        tile = min(tile, _round_up(-(-n // 2), align))          # keep >= 2 grid steps
    if tile >= n:
        return n                                                # full-extent block: always legal
    return max((tile // align) * align, align)


# ----------------------------- kernel -----------------------------------------

def _planar_kernel(b_ref, z_ref, w_ref, u_ref, o_ref):
    """Natural (N, D) layout: batch on sublanes, dim on lanes."""
    z = z_ref[...].astype(jnp.float32)                     # (TILE_N, D)
    w = w_ref[...].astype(jnp.float32)                     # (1, D)
    u = u_ref[...].astype(jnp.float32)                     # (1, D)
    b = b_ref[0]
    # a = z @ w.T + b as a lane (XLU/VPU) reduction; MXU would be 1-wide waste.
    a = jnp.sum(z * w, axis=-1, keepdims=True) + b         # (TILE_N, 1)
    o_ref[...] = (z + u * jnp.tanh(a)).astype(o_ref.dtype)


# ----------------------------- wrapper -----------------------------------------

def _u_effective(w, u):
    """Functional version of the `if u@w.T < -1: u <- u_hat()` fix-up."""
    wtu = jnp.sum(u * w, axis=-1, keepdims=True)                       # (1, 1)
    m_wtu = -1.0 + jax.nn.softplus(wtu)                                # overflow-safe log1p(exp)
    u_hat = u + (m_wtu - wtu) * w / jnp.sum(w * w, axis=-1, keepdims=True)
    return jnp.where(wtu[0, 0] < -1.0, u_hat, u)


def _planar_flow_jax(z, w, b, u_eff):
    """Plain-JAX path (tiny inputs / huge-D fallback); f32 compute, cast back."""
    zf = z.astype(jnp.float32)
    a = zf @ w.astype(jnp.float32).T + b.astype(jnp.float32)
    return (zf + u_eff.astype(jnp.float32) * jnp.tanh(a)).astype(z.dtype)


def planar_flow_forward(z, w, b, u):
    """z: (N, D); w, u: (1, D); b: (1,)  ->  zk: (N, D)."""
    u_eff = _u_effective(w, u)
    n, d = z.shape
    itemsize = jnp.dtype(z.dtype).itemsize

    # Tiny inputs: Pallas launch + DMA setup dominates; let XLA fuse it.
    if n * d * itemsize <= _FAST_PATH_BYTES:
        return _planar_flow_jax(z, w, b, u_eff)

    vmem_limit = _vmem_limit_bytes()

    # Huge-D guard: even an 8-row block can't be double-buffered -> fall back.
    if _SUBLANES * d * itemsize * 5 > vmem_limit:
        # TODO(synk): tile over D with a partial-sum accumulator for `a` instead.
        return _planar_flow_jax(z, w, b, u_eff)

    tile_n = _pick_batch_tile(n, d, itemsize, vmem_limit)
    b_smem = b.reshape((1,)).astype(jnp.float32)

    return pl.pallas_call(
        _planar_kernel,
        out_shape=jax.ShapeDtypeStruct((n, d), z.dtype),
        grid_spec=pltpu.PrefetchScalarGridSpec(
            num_scalar_prefetch=0,
            grid=(pl.cdiv(n, tile_n),),
            in_specs=[
                pl.BlockSpec(memory_space=pltpu.SMEM),             # b (scalar)
                pl.BlockSpec((tile_n, d), lambda i: (i, 0)),       # z tile
                pl.BlockSpec((1, d), lambda i: (0, 0)),            # w
                pl.BlockSpec((1, d), lambda i: (0, 0)),            # u
            ],
            out_specs=pl.BlockSpec((tile_n, d), lambda i: (i, 0)),
        ),
        compiler_params=pltpu.CompilerParams(
            dimension_semantics=("parallel",),      # shard batch tiles across TCs (v7x)
            vmem_limit_bytes=vmem_limit,
        ),
    )(b_smem, z, w, u_eff)


# ----------------------------- reference ---------------------------------------

def planar_flow_reference(z, w, b, u):
    u_eff = _u_effective(w, u)
    a = z @ w.T + b
    return z + u_eff * jnp.tanh(a)


if __name__ == "__main__":
    key = jax.random.PRNGKey(0)

    def make_case(key, batch, dim):
        k1, k2, k3, k4, key = jax.random.split(key, 5)
        z = jax.random.normal(k1, (batch, dim), dtype=jnp.float32)
        w = 0.1 * jax.random.normal(k2, (1, dim), dtype=jnp.float32)
        b = 0.1 * jax.random.normal(k3, (1,), dtype=jnp.float32)
        u = 0.1 * jax.random.normal(k4, (1, dim), dtype=jnp.float32)
        return key, (z, w, b, u)

    cases = [
        (64, 32),      # tiny  -> fast path (plain JAX)
        (2048, 32),    # D<128 -> Pallas kernel, natural layout, masked stores, 2 grid steps
        (1030, 128),   # ragged N, lane-aligned D -> Pallas kernel, ragged last tile
        (4096, 256),   # larger lane-aligned D -> Pallas kernel, 2 grid steps
    ]

    for batch, dim in cases:
        key, (z, w, b, u) = make_case(key, batch, dim)
        zk = planar_flow_forward(z, w, b, u)
        jax.block_until_ready(zk)
        ref = planar_flow_reference(z, w, b, u)
        assert zk.shape == (batch, dim), (zk.shape, (batch, dim))
        assert jnp.allclose(zk, ref, atol=1e-5, rtol=1e-5), f"mismatch at N={batch}, D={dim}"

    print("KERNEL_OK")
</pallas_src>

<mosaic_0001>
module attributes {stable_mosaic.version = 11 : i64} {
  func.func @_planar_kernel(%arg0: i32, %arg1: memref<1xf32, #tpu.memory_space<smem>>, %arg2: memref<1024x32xf32, #tpu.memory_space<vmem>>, %arg3: memref<1x32xf32, #tpu.memory_space<vmem>>, %arg4: memref<1x32xf32, #tpu.memory_space<vmem>>, %arg5: memref<1024x32xf32, #tpu.memory_space<vmem>>) attributes {dimension_semantics = [#tpu.dimension_semantics<parallel>], iteration_bounds = array<i64: 2>, scalar_prefetch = 0 : i64, scratch_operands = 0 : i64, tpu.core_type = #tpu.core_type<tc>, window_params = [{transform_indices = @transform_0, window_bounds = array<i64: 1>}, {transform_indices = @transform_1, window_bounds = array<i64: 1024, 32>}, {pipeline_mode = #tpu.pipeline_mode<synchronous>, transform_indices = @transform_2, window_bounds = array<i64: 1, 32>}, {pipeline_mode = #tpu.pipeline_mode<synchronous>, transform_indices = @transform_3, window_bounds = array<i64: 1, 32>}, {transform_indices = @transform_4, window_bounds = array<i64: 1024, 32>}]} {
    %c0 = arith.constant 0 : index
    %c0_0 = arith.constant 0 : index
    %0 = vector.load %arg2[%c0, %c0_0] : memref<1024x32xf32, #tpu.memory_space<vmem>>, vector<1024x32xf32>
    %c0_1 = arith.constant 0 : index
    %c0_2 = arith.constant 0 : index
    %1 = vector.load %arg3[%c0_1, %c0_2] : memref<1x32xf32, #tpu.memory_space<vmem>>, vector<1x32xf32>
    %c0_3 = arith.constant 0 : index
    %c0_4 = arith.constant 0 : index
    %2 = vector.load %arg4[%c0_3, %c0_4] : memref<1x32xf32, #tpu.memory_space<vmem>>, vector<1x32xf32>
    %c0_5 = arith.constant 0 : index
    %3 = memref.load %arg1[%c0_5] : memref<1xf32, #tpu.memory_space<smem>>
    %4 = vector.broadcast %1 : vector<1x32xf32> to vector<1024x32xf32>
    %5 = arith.mulf %0, %4 : vector<1024x32xf32>
    %cst = arith.constant dense<0.000000e+00> : vector<1024xf32>
    %6 = vector.multi_reduction <add>, %5, %cst [1] : vector<1024x32xf32> to vector<1024xf32>
    %7 = vector.shape_cast %6 : vector<1024xf32> to vector<1024x1xf32>
    %8 = vector.broadcast %3 : f32 to vector<1024x1xf32>
    %9 = arith.addf %7, %8 : vector<1024x1xf32>
    %10 = math.tanh %9 : vector<1024x1xf32>
    %11 = vector.broadcast %2 : vector<1x32xf32> to vector<1024x32xf32>
    %12 = vector.broadcast %10 : vector<1024x1xf32> to vector<1024x32xf32>
    %13 = arith.mulf %11, %12 : vector<1024x32xf32>
    %14 = arith.addf %0, %13 : vector<1024x32xf32>
    %c0_6 = arith.constant 0 : index
    %c0_7 = arith.constant 0 : index
    %15 = vector.load %arg5[%c0_6, %c0_7] : memref<1024x32xf32, #tpu.memory_space<vmem>>, vector<1024x32xf32>
    tpu.vector_store %arg5[%c0_6, %c0_7], %14 {strides = array<i32>} : memref<1024x32xf32, #tpu.memory_space<vmem>>, vector<1024x32xf32>,
    return
  }
  func.func @transform_0(%arg0: i32) -> i32 {
    %c0_i32 = arith.constant 0 : i32
    %c0_i32_0 = arith.constant 0 : i32
    return %c0_i32 : i32
  }
  func.func @transform_1(%arg0: i32) -> (i32, i32) {
    %c0_i32 = arith.constant 0 : i32
    %c0_i32_0 = arith.constant 0 : i32
    return %arg0, %c0_i32 : i32, i32
  }
  func.func @transform_2(%arg0: i32) -> (i32, i32) {
    %c0_i32 = arith.constant 0 : i32
    %c0_i32_0 = arith.constant 0 : i32
    %c0_i32_1 = arith.constant 0 : i32
    return %c0_i32, %c0_i32_0 : i32, i32
  }
  func.func @transform_3(%arg0: i32) -> (i32, i32) {
    %c0_i32 = arith.constant 0 : i32
    %c0_i32_0 = arith.constant 0 : i32
    %c0_i32_1 = arith.constant 0 : i32
    return %c0_i32, %c0_i32_0 : i32, i32
  }
  func.func @transform_4(%arg0: i32) -> (i32, i32) {
    %c0_i32 = arith.constant 0 : i32
    %c0_i32_0 = arith.constant 0 : i32
    return %arg0, %c0_i32 : i32, i32
  }
}

</mosaic_0001>

<bundles_post_ra>
// kernel: tpu_custom_call.1
= control target key start
LH: loop header
LB: loop body
LE: loop exit
PB: predicated region body
PF: predicated region fallthrough
CT: control target
= control target key end

     0   :  { %s1978_s17 = smov 0   ;;  %s3109_s0 = inlined_call_operand.<no memory space> [shape: f32[1], index: 0, kind: input, shape index: {}]   ;;  %s3110_s1 = inlined_call_operand.vmem [shape: f32[2048,32], index: 1, kind: input, shape index: {}]   ;;  %s3111_s2 = inlined_call_operand.vmem [shape: f32[1,32], index: 2, kind: input, shape index: {}]   ;;  %s3112_s3 = inlined_call_operand.vmem [shape: f32[1,32], index: 3, kind: input, shape index: {}]   ;;  %s3113_s4 = inlined_call_operand.vmem [shape: f32[2048,32], index: 4, kind: output, shape index: {}]  }
   0x1   :  { %9 = sst [smem:[#allocation2]] %s3109_s0 }
   0x2 LB: > { %s1555_s18 = sadd.s32 4294967295, %s1948_s17   ;;  %p1559_p0 = scmp.ge.s32.totalorder %s1948_s17, 1  ;;  %s1948_s17 = sphi %s1978_s17, %s15_s17  }
   0x3   : > { %p164_p1 = scmp.lt.s32.totalorder %s1948_s17, 3 }
   0x5   : > { %p165_p2 = pnand %p1559_p0, %p164_p1 }
   0x6   : > { %s1560_s19 = sshll.u32 (!%p165_p2), %s1555_s18, 7  ;;  %v1992_v0 = vld [vmem:[%s3111_s2] ss:$0 sm:$0xff] (!%p165_p2)  ;;  %vm467_vm0 = vcmask (!%p165_p2), 261120   ;;  %s332_s25 = sld [smem:[#allocation2]] (!%p165_p2) }
   0x7   : > { %168 = sbr.rel (%p165_p2) target bundleno = 434 (0x1b2), region = 36  ;;  %p191_p3 = scmp.lt.s32.totalorder (!%p165_p2), %s1560_s19, 255 }
   0xe   : > { %s3115_s19 = smov (!%p191_p3, %s1560_s19), 255 }
   0xf   : > { %s1561_s0 = sshll.u32 %s3115_s19, 3 }
  0x10   : > { %s1999_s24 = scalar_lea.vmem %s3110_s1, %s1561_s0  ;;  %s2331_s30 = scalar_lea.vmem %s3113_s4, %s1561_s0 }
  0x11   : > { %v2002_v1 = vld [vmem:[%s1999_s24 + $0x10] sm:$0xff]  ;;  %v2005_v2 = vld [vmem:[%s1999_s24] sm:$0xff]  ;;  %v2008_v3 = vld [vmem:[%s1999_s24 + $0x18] sm:$0xff] }
  0x12   : > { %v341_v4 = vmul.f32 %v1992_v0, %v2002_v1  ;;  %v339_v5 = vmul.f32 %v1992_v0, %v2005_v2  ;;  %v342_v6 = vmul.f32 %v1992_v0, %v2008_v3  ;;  %v2017_v7 = vld [vmem:[%s1999_s24 + $0x8] sm:$0xff]  ;;  %v2025_v10 = vld [vmem:[%s1999_s24 + $0x20] sm:$0xff]  ;;  %v2036_v17 = vld [vmem:[%s1999_s24 + $0x38] sm:$0xff] }
  0x13   : > { %v340_v8 = vmul.f32 %v1992_v0, %v2017_v7  ;;  %v2022_v9 = vld [vmem:[%s1999_s24 + $0x28] sm:$0xff]  ;;  %v343_v16 = vmul.f32 %v1992_v0, %v2025_v10  ;;  %v2039_v18 = vld [vmem:[%s1999_s24 + $0x30] sm:$0xff]  ;;  %v346_v21 = vmul.f32 %v1992_v0, %v2036_v17  ;;  %v2051_v24 = vld [vmem:[%s1999_s24 + $0x40] sm:$0xff] }
  0x14   : > { %v474_v11 = vsel %vm467_vm0, %v341_v4, 0.0  ;;  %v468_v12 = vsel %vm467_vm0, %v339_v5, 0.0  ;;  %v477_v13 = vsel %vm467_vm0, %v342_v6, 0.0  ;;  %v344_v15 = vmul.f32 %v1992_v0, %v2022_v9  ;;  %v2048_v23 = vld [vmem:[%s1999_s24 + $0x48] sm:$0xff]  ;;  %v2060_v29 = vld [vmem:[%s1999_s24 + $0x58] sm:$0xff]  ;;  %v2063_v30 = vld [vmem:[%s1999_s24 + $0x50] sm:$0xff] }
  0x15   : > { %475 = vadd.xlane.f32.xlu1 %v474_v11  ;;  %469 = vadd.xlane.f32.xlu0 %v468_v12  ;;  %v471_v14 = vsel %vm467_vm0, %v340_v8, 0.0  ;;  %v480_v20 = vsel %vm467_vm0, %v343_v16, 0.0  ;;  %v345_v22 = vmul.f32 %v1992_v0, %v2039_v18  ;;  %v489_v25 = vsel %vm467_vm0, %v346_v21, 0.0  ;;  %v2072_v35 = vld [vmem:[%s1999_s24 + $0x68] sm:$0xff]  ;;  %v2075_v36 = vld [vmem:[%s1999_s24 + $0x60] sm:$0xff]  ;;  %v2084_v41 = vld [vmem:[%s1999_s24 + $0x78] sm:$0xff] }
  0x16   : > { %v483_v19 = vsel %vm467_vm0, %v344_v15, 0.0  ;;  %v348_v27 = vmul.f32 %v1992_v0, %v2048_v23  ;;  %v347_v28 = vmul.f32 %v1992_v0, %v2051_v24  ;;  %v350_v33 = vmul.f32 %v1992_v0, %v2060_v29  ;;  %v2087_v42 = vld [vmem:[%s1999_s24 + $0x70] sm:$0xff]  ;;  %v2096_v47 = vld [vmem:[%s1999_s24 + $0x88] sm:$0xff]  ;;  %v2099_v48 = vld [vmem:[%s1999_s24 + $0x80] sm:$0xff] }
  0x17   : > { %v486_v26 = vsel %vm467_vm0, %v345_v22, 0.0  ;;  %v349_v34 = vmul.f32 %v1992_v0, %v2063_v30  ;;  %v352_v39 = vmul.f32 %v1992_v0, %v2072_v35  ;;  %v351_v40 = vmul.f32 %v1992_v0, %v2075_v36  ;;  %v2108_v53 = vld [vmem:[%s1999_s24 + $0x98] sm:$0xff]  ;;  %v2111_v54 = vld [vmem:[%s1999_s24 + $0x90] sm:$0xff]  ;;  %v2120_v59 = vld [vmem:[%s1999_s24 + $0xa8] sm:$0xff] }
  0x18   : > { %v495_v31 = vsel %vm467_vm0, %v348_v27, 0.0  ;;  %v492_v32 = vsel %vm467_vm0, %v347_v28, 0.0  ;;  %v501_v37 = vsel %vm467_vm0, %v350_v33, 0.0  ;;  %v354_v45 = vmul.f32 %v1992_v0, %v2084_v41  ;;  %v222_v60 = vld [vmem:[%s1999_s24 + $0xa0] sm:$0xff]  ;;  %v225_v5 = vld [vmem:[%s1999_s24 + $0xb8] sm:$0xff]  ;;  %v224_v6 = vld [vmem:[%s1999_s24 + $0xb0] sm:$0xff] }
  0x19   : > { %478 = vadd.xlane.f32.xlu1 %v477_v13  ;;  %472 = vadd.xlane.f32.xlu0 %v471_v14  ;;  %v498_v38 = vsel %vm467_vm0, %v349_v34, 0.0  ;;  %v507_v43 = vsel %vm467_vm0, %v352_v39, 0.0  ;;  %v504_v44 = vsel %vm467_vm0, %v351_v40, 0.0  ;;  %v353_v46 = vmul.f32 %v1992_v0, %v2087_v42  ;;  %v227_v14 = vld [vmem:[%s1999_s24 + $0xc8] sm:$0xff]  ;;  %v226_v15 = vld [vmem:[%s1999_s24 + $0xc0] sm:$0xff]  ;;  %v229_v22 = vld [vmem:[%s1999_s24 + $0xd8] sm:$0xff] }
  0x1a   : > { %v513_v49 = vsel %vm467_vm0, %v354_v45, 0.0  ;;  %v356_v51 = vmul.f32 %v1992_v0, %v2096_v47  ;;  %v355_v52 = vmul.f32 %v1992_v0, %v2099_v48  ;;  %v358_v57 = vmul.f32 %v1992_v0, %v2108_v53  ;;  %v230_v33 = vld [vmem:[%s1999_s24 + $0xe0] sm:$0xff]  ;;  %v233_v40 = vld [vmem:[%s1999_s24 + $0xf8] sm:$0xff] }
  0x1b   : > { %v510_v50 = vsel %vm467_vm0, %v353_v46, 0.0  ;;  %v357_v58 = vmul.f32 %v1992_v0, %v2111_v54  ;;  %v360_v63 = vmul.f32 %v1992_v0, %v2120_v59  ;;  %v359_v4 = vmul.f32 %v1992_v0, %v222_v60  ;;  %v236_v60 = vld [vmem:[%s1999_s24 + $0x110] sm:$0xff] }
  0x1c   : > { %v519_v55 = vsel %vm467_vm0, %v356_v51, 0.0  ;;  %v516_v56 = vsel %vm467_vm0, %v355_v52, 0.0  ;;  %v525_v61 = vsel %vm467_vm0, %v358_v57, 0.0  ;;  %v362_v12 = vmul.f32 %v1992_v0, %v225_v5  ;;  %v234_v51 = vld [vmem:[%s1999_s24 + $0x100] sm:$0xff]  ;;  %v239_v5 = vld [vmem:[%s1999_s24 + $0x128] sm:$0xff] }
  0x1d   : > { %484 = vadd.xlane.f32.xlu1 %v483_v19  ;;  %481 = vadd.xlane.f32.xlu0 %v480_v20  ;;  %v522_v62 = vsel %vm467_vm0, %v357_v58, 0.0  ;;  %v531_v8 = vsel %vm467_vm0, %v360_v63, 0.0  ;;  %v528_v11 = vsel %vm467_vm0, %v359_v4, 0.0  ;;  %v361_v13 = vmul.f32 %v1992_v0, %v224_v6  ;;  %v237_v58 = vld [vmem:[%s1999_s24 + $0x118] sm:$0xff]  ;;  %v238_v6 = vld [vmem:[%s1999_s24 + $0x120] sm:$0xff] }
  0x1e   : > { %v537_v16 = vsel %vm467_vm0, %v362_v12, 0.0  ;;  %v364_v20 = vmul.f32 %v1992_v0, %v227_v14  ;;  %v363_v21 = vmul.f32 %v1992_v0, %v226_v15  ;;  %v366_v28 = vmul.f32 %v1992_v0, %v229_v22  ;;  %v241_v14 = vld [vmem:[%s1999_s24 + $0x138] sm:$0xff]  ;;  %v240_v15 = vld [vmem:[%s1999_s24 + $0x130] sm:$0xff]  ;;  %v243_v22 = vld [vmem:[%s1999_s24 + $0x148] sm:$0xff] }
  0x1f   : > { %v534_v19 = vsel %vm467_vm0, %v361_v13, 0.0  ;;  %v367_v39 = vmul.f32 %v1992_v0, %v230_v33  ;;  %v370_v46 = vmul.f32 %v1992_v0, %v233_v40  ;;  %v371_v57 = vmul.f32 %v1992_v0, %v234_v51  ;;  %v244_v33 = vld [vmem:[%s1999_s24 + $0x150] sm:$0xff]  ;;  %v247_v40 = vld [vmem:[%s1999_s24 + $0x168] sm:$0xff] }
  0x20   : > { %v540_v27 = vsel %vm467_vm0, %v363_v21, 0.0  ;;  %v549_v34 = vsel %vm467_vm0, %v366_v28, 0.0  ;;  %v374_v63 = vmul.f32 %v1992_v0, %v237_v58  ;;  %v373_v4 = vmul.f32 %v1992_v0, %v236_v60  ;;  %v248_v51 = vld [vmem:[%s1999_s24 + $0x170] sm:$0xff]  ;;  %v251_v58 = vld [vmem:[%s1999_s24 + $0x188] sm:$0xff]  ;;  %v250_v60 = vld [vmem:[%s1999_s24 + $0x180] sm:$0xff] }
  0x21   : > { %490 = vadd.xlane.f32.xlu1 %v489_v25  ;;  %487 = vadd.xlane.f32.xlu0 %v486_v26  ;;  %v228_v25 = vld [vmem:[%s1999_s24 + $0xd0] sm:$0xff]  ;;  %v543_v26 = vsel %vm467_vm0, %v364_v20, 0.0  ;;  %v552_v45 = vsel %vm467_vm0, %v367_v39, 0.0  ;;  %v561_v52 = vsel %vm467_vm0, %v370_v46, 0.0  ;;  %v376_v12 = vmul.f32 %v1992_v0, %v239_v5  ;;  %v253_v5 = vld [vmem:[%s1999_s24 + $0x198] sm:$0xff] }
  0x22   : > { %v375_v13 = vmul.f32 %v1992_v0, %v238_v6  ;;  %v378_v20 = vmul.f32 %v1992_v0, %v241_v14  ;;  %v377_v21 = vmul.f32 %v1992_v0, %v240_v15  ;;  %v380_v28 = vmul.f32 %v1992_v0, %v243_v22  ;;  %v252_v6 = vld [vmem:[%s1999_s24 + $0x190] sm:$0xff]  ;;  %v255_v14 = vld [vmem:[%s1999_s24 + $0x1a8] sm:$0xff]  ;;  %v254_v15 = vld [vmem:[%s1999_s24 + $0x1a0] sm:$0xff] }
  0x23   : > { %v381_v39 = vmul.f32 %v1992_v0, %v244_v33  ;;  %v384_v46 = vmul.f32 %v1992_v0, %v247_v40  ;;  %v257_v22 = vld [vmem:[%s1999_s24 + $0x1b8] sm:$0xff]  ;;  %v258_v33 = vld [vmem:[%s1999_s24 + $0x1c0] sm:$0xff] }
  0x24   : > { %v261_v40 = vld [vmem:[%s1999_s24 + $0x1d8] sm:$0xff] }
  0x25   : > { %496 = vadd.xlane.f32.xlu1 %v495_v31  ;;  %493 = vadd.xlane.f32.xlu0 %v492_v32  ;;  %v365_v31 = vmul.f32 %v1992_v0, %v228_v25  ;;  %v231_v32 = vld [vmem:[%s1999_s24 + $0xe8] sm:$0xff]  ;;  %v242_v25 = vld [vmem:[%s1999_s24 + $0x140] sm:$0xff] }
  0x29   : > { %502 = vadd.xlane.f32.xlu1 %v501_v37  ;;  %499 = vadd.xlane.f32.xlu0 %v498_v38  ;;  %v546_v37 = vsel %vm467_vm0, %v365_v31, 0.0  ;;  %v368_v38 = vmul.f32 %v1992_v0, %v231_v32  ;;  %v379_v31 = vmul.f32 %v1992_v0, %v242_v25  ;;  %v245_v32 = vld [vmem:[%s1999_s24 + $0x158] sm:$0xff]  ;;  %v256_v25 = vld [vmem:[%s1999_s24 + $0x1b0] sm:$0xff] }
  0x2d   : > { %508 = vadd.xlane.f32.xlu1 %v507_v43  ;;  %505 = vadd.xlane.f32.xlu0 %v504_v44  ;;  %v232_v43 = vld [vmem:[%s1999_s24 + $0xf0] sm:$0xff]  ;;  %v555_v44 = vsel %vm467_vm0, %v368_v38, 0.0  ;;  %v382_v38 = vmul.f32 %v1992_v0, %v245_v32  ;;  %v259_v32 = vld [vmem:[%s1999_s24 + $0x1c8] sm:$0xff] }
  0x31   : > { %514 = vadd.xlane.f32.xlu1 %v513_v49  ;;  %511 = vadd.xlane.f32.xlu0 %v510_v50  ;;  %v369_v49 = vmul.f32 %v1992_v0, %v232_v43  ;;  %v235_v50 = vld [vmem:[%s1999_s24 + $0x108] sm:$0xff]  ;;  %v246_v43 = vld [vmem:[%s1999_s24 + $0x160] sm:$0xff] }
  0x35   : > { %520 = vadd.xlane.f32.xlu1 %v519_v55  ;;  %517 = vadd.xlane.f32.xlu0 %v516_v56  ;;  %v558_v55 = vsel %vm467_vm0, %v369_v49, 0.0  ;;  %v372_v56 = vmul.f32 %v1992_v0, %v235_v50  ;;  %v383_v49 = vmul.f32 %v1992_v0, %v246_v43  ;;  %v249_v50 = vld [vmem:[%s1999_s24 + $0x178] sm:$0xff]  ;;  %v260_v43 = vld [vmem:[%s1999_s24 + $0x1d0] sm:$0xff] }
  0x39   : > { %526 = vadd.xlane.f32.xlu1 %v525_v61  ;;  %523 = vadd.xlane.f32.xlu0 %v522_v62  ;;  %v567_v61 = vsel %vm467_vm0, %v372_v56, 0.0  ;;  %v564_v62 = vsel %vm467_vm0, %v371_v57, 0.0  ;;  %v386_v56 = vmul.f32 %v1992_v0, %v249_v50  ;;  %v385_v57 = vmul.f32 %v1992_v0, %v248_v51  ;;  %v263_v50 = vld [vmem:[%s1999_s24 + $0x1e8] sm:$0xff]  ;;  %v262_v51 = vld [vmem:[%s1999_s24 + $0x1e0] sm:$0xff] }
  0x3d   : > { %532 = vadd.xlane.f32.xlu1 %v531_v8  ;;  %529 = vadd.xlane.f32.xlu0 %v528_v11  ;;  %v573_v8 = vsel %vm467_vm0, %v374_v63, 0.0  ;;  %v570_v11 = vsel %vm467_vm0, %v373_v4, 0.0  ;;  %v388_v63 = vmul.f32 %v1992_v0, %v251_v58  ;;  %v387_v4 = vmul.f32 %v1992_v0, %v250_v60  ;;  %v265_v58 = vld [vmem:[%s1999_s24 + $0x1f8] sm:$0xff]  ;;  %v264_v60 = vld [vmem:[%s1999_s24 + $0x1f0] sm:$0xff] }
  0x41   : > { %538 = vadd.xlane.f32.xlu1 %v537_v16  ;;  %535 = vadd.xlane.f32.xlu0 %v534_v19  ;;  %v579_v16 = vsel %vm467_vm0, %v376_v12, 0.0  ;;  %v576_v19 = vsel %vm467_vm0, %v375_v13, 0.0  ;;  %v390_v12 = vmul.f32 %v1992_v0, %v253_v5  ;;  %v389_v13 = vmul.f32 %v1992_v0, %v252_v6  ;;  %v267_v5 = vld [vmem:[%s1999_s24 + $0x208] sm:$0xff]  ;;  %v266_v6 = vld [vmem:[%s1999_s24 + $0x200] sm:$0xff] }
  0x45   : > { %544 = vadd.xlane.f32.xlu1 %v543_v26  ;;  %541 = vadd.xlane.f32.xlu0 %v540_v27  ;;  %v585_v26 = vsel %vm467_vm0, %v378_v20, 0.0  ;;  %v582_v27 = vsel %vm467_vm0, %v377_v21, 0.0  ;;  %v392_v20 = vmul.f32 %v1992_v0, %v255_v14  ;;  %v391_v21 = vmul.f32 %v1992_v0, %v254_v15  ;;  %v269_v14 = vld [vmem:[%s1999_s24 + $0x218] sm:$0xff]  ;;  %v268_v15 = vld [vmem:[%s1999_s24 + $0x210] sm:$0xff] }
  0x49   : > { %550 = vadd.xlane.f32.xlu1 %v549_v34  ;;  %547 = vadd.xlane.f32.xlu0 %v546_v37  ;;  %v591_v34 = vsel %vm467_vm0, %v380_v28, 0.0  ;;  %v588_v37 = vsel %vm467_vm0, %v379_v31, 0.0  ;;  %v394_v28 = vmul.f32 %v1992_v0, %v257_v22  ;;  %v393_v31 = vmul.f32 %v1992_v0, %v256_v25  ;;  %v271_v22 = vld [vmem:[%s1999_s24 + $0x228] sm:$0xff]  ;;  %v270_v25 = vld [vmem:[%s1999_s24 + $0x220] sm:$0xff] }
  0x4d   : > { %556 = vadd.xlane.f32.xlu1 %v555_v44  ;;  %553 = vadd.xlane.f32.xlu0 %v552_v45  ;;  %v597_v44 = vsel %vm467_vm0, %v382_v38, 0.0  ;;  %v594_v45 = vsel %vm467_vm0, %v381_v39, 0.0  ;;  %v396_v38 = vmul.f32 %v1992_v0, %v259_v32  ;;  %v395_v39 = vmul.f32 %v1992_v0, %v258_v33  ;;  %v273_v32 = vld [vmem:[%s1999_s24 + $0x238] sm:$0xff]  ;;  %v272_v33 = vld [vmem:[%s1999_s24 + $0x230] sm:$0xff] }
  0x51   : > { %562 = vadd.xlane.f32.xlu1 %v561_v52  ;;  %559 = vadd.xlane.f32.xlu0 %v558_v55  ;;  %v603_v52 = vsel %vm467_vm0, %v384_v46, 0.0  ;;  %v600_v55 = vsel %vm467_vm0, %v383_v49, 0.0  ;;  %v398_v46 = vmul.f32 %v1992_v0, %v261_v40  ;;  %v397_v49 = vmul.f32 %v1992_v0, %v260_v43  ;;  %v275_v40 = vld [vmem:[%s1999_s24 + $0x248] sm:$0xff]  ;;  %v274_v43 = vld [vmem:[%s1999_s24 + $0x240] sm:$0xff] }
  0x55   : > { %568 = vadd.xlane.f32.xlu1 %v567_v61  ;;  %565 = vadd.xlane.f32.xlu0 %v564_v62  ;;  %v609_v61 = vsel %vm467_vm0, %v386_v56, 0.0  ;;  %v606_v62 = vsel %vm467_vm0, %v385_v57, 0.0  ;;  %v400_v56 = vmul.f32 %v1992_v0, %v263_v50  ;;  %v399_v57 = vmul.f32 %v1992_v0, %v262_v51  ;;  %v277_v50 = vld [vmem:[%s1999_s24 + $0x258] sm:$0xff]  ;;  %v276_v51 = vld [vmem:[%s1999_s24 + $0x250] sm:$0xff] }
  0x59   : > { %574 = vadd.xlane.f32.xlu1 %v573_v8  ;;  %571 = vadd.xlane.f32.xlu0 %v570_v11  ;;  %v615_v8 = vsel %vm467_vm0, %v388_v63, 0.0  ;;  %v612_v11 = vsel %vm467_vm0, %v387_v4, 0.0  ;;  %v402_v63 = vmul.f32 %v1992_v0, %v265_v58  ;;  %v401_v4 = vmul.f32 %v1992_v0, %v264_v60 }
  0x5a   : > { %v414_v60 = vmul.f32 %v1992_v0, %v277_v50 }
  0x5d   : > { %580 = vadd.xlane.f32.xlu1 %v579_v16  ;;  %577 = vadd.xlane.f32.xlu0 %v576_v19  ;;  %v621_v16 = vsel %vm467_vm0, %v390_v12, 0.0  ;;  %v618_v19 = vsel %vm467_vm0, %v389_v13, 0.0  ;;  %v404_v12 = vmul.f32 %v1992_v0, %v267_v5  ;;  %v403_v13 = vmul.f32 %v1992_v0, %v266_v6  ;;  %v278_v5 = vld [vmem:[%s1999_s24 + $0x260] sm:$0xff] }
  0x61   : > { %586 = vadd.xlane.f32.xlu1 %v585_v26  ;;  %583 = vadd.xlane.f32.xlu0 %v582_v27  ;;  %v627_v26 = vsel %vm467_vm0, %v392_v20, 0.0  ;;  %v624_v27 = vsel %vm467_vm0, %v391_v21, 0.0  ;;  %v406_v20 = vmul.f32 %v1992_v0, %v269_v14  ;;  %v405_v21 = vmul.f32 %v1992_v0, %v268_v15  ;;  %v281_v15 = vld [vmem:[%s1999_s24 + $0x278] sm:$0xff] }
  0x62   : > { %v415_v14 = vmul.f32 %v1992_v0, %v278_v5 }
  0x65   : > { %592 = vadd.xlane.f32.xlu1 %v591_v34  ;;  %589 = vadd.xlane.f32.xlu0 %v588_v37  ;;  %v633_v34 = vsel %vm467_vm0, %v394_v28, 0.0  ;;  %v630_v37 = vsel %vm467_vm0, %v393_v31, 0.0  ;;  %v408_v28 = vmul.f32 %v1992_v0, %v271_v22  ;;  %v407_v31 = vmul.f32 %v1992_v0, %v270_v25 }
  0x69   : > { %598 = vadd.xlane.f32.xlu1 %v597_v44  ;;  %595 = vadd.xlane.f32.xlu0 %v594_v45  ;;  %v639_v44 = vsel %vm467_vm0, %v396_v38, 0.0  ;;  %v636_v45 = vsel %vm467_vm0, %v395_v39, 0.0  ;;  %v410_v38 = vmul.f32 %v1992_v0, %v273_v32  ;;  %v409_v39 = vmul.f32 %v1992_v0, %v272_v33  ;;  %v283_v33 = vld [vmem:[%s1999_s24 + $0x288] sm:$0xff] }
  0x6d   : > { %604 = vadd.xlane.f32.xlu1 %v603_v52  ;;  %601 = vadd.xlane.f32.xlu0 %v600_v55  ;;  %v645_v52 = vsel %vm467_vm0, %v398_v46, 0.0  ;;  %v642_v55 = vsel %vm467_vm0, %v397_v49, 0.0  ;;  %v412_v46 = vmul.f32 %v1992_v0, %v275_v40  ;;  %v411_v49 = vmul.f32 %v1992_v0, %v274_v43 }
  0x6f   : > { %v684_v58 = vsel %vm467_vm0, %v411_v49, 0.0  ;;  %v284_v49 = vld [vmem:[%s1999_s24 + $0x290] sm:$0xff] }
  0x71   : > { %610 = vadd.xlane.f32.xlu1 %v609_v61  ;;  %607 = vadd.xlane.f32.xlu0 %v606_v62  ;;  %v651_v61 = vsel %vm467_vm0, %v400_v56, 0.0  ;;  %v648_v62 = vsel %vm467_vm0, %v399_v57, 0.0  ;;  %v687_v57 = vsel %vm467_vm0, %v412_v46, 0.0  ;;  %v285_v46 = vld [vmem:[%s1999_s24 + $0x298] sm:$0xff] }
  0x75   : > { %616 = vadd.xlane.f32.xlu1 %v615_v8  ;;  %613 = vadd.xlane.f32.xlu0 %v612_v11  ;;  %v657_v8 = vsel %vm467_vm0, %v402_v63, 0.0  ;;  %v654_v11 = vsel %vm467_vm0, %v401_v4, 0.0 }
  0x79   : > { %622 = vadd.xlane.f32.xlu1 %v621_v16  ;;  %619 = vadd.xlane.f32.xlu0 %v618_v19  ;;  %v663_v16 = vsel %vm467_vm0, %v404_v12, 0.0  ;;  %v660_v19 = vsel %vm467_vm0, %v403_v13, 0.0  ;;  %v693_v12 = vsel %vm467_vm0, %v414_v60, 0.0  ;;  %v422_v60 = vmul.f32 %v1992_v0, %v285_v46 }
  0x7d   : > { %628 = vadd.xlane.f32.xlu1 %v627_v26  ;;  %625 = vadd.xlane.f32.xlu0 %v624_v27  ;;  %v669_v26 = vsel %vm467_vm0, %v406_v20, 0.0  ;;  %v666_v27 = vsel %vm467_vm0, %v405_v21, 0.0  ;;  %v280_v20 = vld [vmem:[%s1999_s24 + $0x270] sm:$0xff]  ;;  %v418_v21 = vmul.f32 %v1992_v0, %v281_v15 }
  0x81   : > { %634 = vadd.xlane.f32.xlu1 %v633_v34  ;;  %631 = vadd.xlane.f32.xlu0 %v630_v37  ;;  %v675_v34 = vsel %vm467_vm0, %v408_v28, 0.0  ;;  %v672_v37 = vsel %vm467_vm0, %v407_v31, 0.0  ;;  %v417_v28 = vmul.f32 %v1992_v0, %v280_v20 }
  0x83   : > { %v702_v43 = vsel %vm467_vm0, %v417_v28, 0.0 }
  0x85   : > { %640 = vadd.xlane.f32.xlu1 %v639_v44  ;;  %637 = vadd.xlane.f32.xlu0 %v636_v45  ;;  %v681_v44 = vsel %vm467_vm0, %v410_v38, 0.0  ;;  %v678_v45 = vsel %vm467_vm0, %v409_v39, 0.0  ;;  %v705_v38 = vsel %vm467_vm0, %v418_v21, 0.0 }
  0x89   : > { %646 = vadd.xlane.f32.xlu1 %v645_v52  ;;  %643 = vadd.xlane.f32.xlu0 %v642_v55  ;;  %v2286_v52 = vstv %s332_s25 }
  0x8d   : > { %652 = vadd.xlane.f32.xlu1 %v651_v61  ;;  %649 = vadd.xlane.f32.xlu0 %v648_v62  ;;  %v413_v61 = vmul.f32 %v1992_v0, %v276_v51  ;;  %v279_v62 = vld [vmem:[%s1999_s24 + $0x268] sm:$0xff] }
  0x8e   : > { %v416_v6 = vmul.f32 %v1992_v0, %v279_v62 }
  0x8f   : > { %v690_v13 = vsel %vm467_vm0, %v413_v61, 0.0  ;;  %v421_v61 = vmul.f32 %v1992_v0, %v284_v49 }
  0x91   : > { %658 = vadd.xlane.f32.xlu1 %v657_v8  ;;  %655 = vadd.xlane.f32.xlu0 %v654_v11 }
  0x95   : > { %664 = vadd.xlane.f32.xlu1 %v663_v16  ;;  %661 = vadd.xlane.f32.xlu0 %v660_v19 }
  0x99   : > { %670 = vadd.xlane.f32.xlu1 %v669_v26  ;;  %667 = vadd.xlane.f32.xlu0 %v666_v27  ;;  %v699_v26 = vsel %vm467_vm0, %v416_v6, 0.0  ;;  %v696_v27 = vsel %vm467_vm0, %v415_v14, 0.0 }
  0x9d   : > { %676 = vadd.xlane.f32.xlu1 %v675_v34  ;;  %673 = vadd.xlane.f32.xlu0 %v672_v37  ;;  %v282_v34 = vld [vmem:[%s1999_s24 + $0x280] sm:$0xff] }
  0x9e   : > { %v2315_v37 = vld [vmem:[%s3112_s3] ss:$0 sm:$0xff] }
  0xa1   : > { %682 = vadd.xlane.f32.xlu1 %v681_v44  ;;  %679 = vadd.xlane.f32.xlu0 %v678_v45  ;;  %v420_v44 = vmul.f32 %v1992_v0, %v283_v33  ;;  %v419_v45 = vmul.f32 %v1992_v0, %v282_v34  ;;  %v289_v34 = vld [vmem:[%s1999_s24 + $0x2b8] sm:$0xff] }
  0xa2   : > { %v476_v55 = vpop.xlane.xlu1 %475  ;;  %v470_v56 = vpop.xlane.xlu0 %469  ;;  %v426_v49 = vmul.f32 %v1992_v0, %v289_v34 }
  0xa3   : > { %v855_v63 = vadd.f32 %v2286_v52, %v476_v55  ;;  %v853_v4 = vadd.f32 %v2286_v52, %v470_v56  ;;  %v711_v5 = vsel %vm467_vm0, %v420_v44, 0.0  ;;  %v708_v6 = vsel %vm467_vm0, %v419_v45, 0.0 }
  0xa5   : > { %1576 = vtanh.f32 %v855_v63  ;;  %688 = vadd.xlane.f32.xlu1 %v687_v57  ;;  %685 = vadd.xlane.f32.xlu0 %v684_v58 }
  0xa6   : > { %1578 = vtanh.f32 %v853_v4  ;;  %v479_v8 = vpop.xlane.xlu1 %478  ;;  %v473_v11 = vpop.xlane.xlu0 %472 }
  0xa7   : > { %v856_v16 = vadd.f32 %v2286_v52, %v479_v8  ;;  %v854_v19 = vadd.f32 %v2286_v52, %v473_v11  ;;  %v287_v8 = vld [vmem:[%s1999_s24 + $0x2a8] sm:$0xff]  ;;  %v286_v11 = vld [vmem:[%s1999_s24 + $0x2a0] sm:$0xff] }
  0xa8   : > { %v423_v20 = vmul.f32 %v1992_v0, %v286_v11 }
  0xa9   : > { %1580 = vtanh.f32 %v856_v16  ;;  %694 = vadd.xlane.f32.xlu1 %v693_v12  ;;  %691 = vadd.xlane.f32.xlu0 %v690_v13 }
  0xaa   : > { %1582 = vtanh.f32 %v854_v19  ;;  %v485_v22 = vpop.xlane.xlu1 %484  ;;  %v482_v25 = vpop.xlane.xlu0 %481 }
  0xab   : > { %v858_v31 = vadd.f32 %v2286_v52, %v485_v22  ;;  %v857_v32 = vadd.f32 %v2286_v52, %v482_v25 }
  0xad   : > { %1584 = vtanh.f32 %v858_v31  ;;  %700 = vadd.xlane.f32.xlu1 %v699_v26  ;;  %697 = vadd.xlane.f32.xlu0 %v696_v27  ;;  %v717_v26 = vsel %vm467_vm0, %v422_v60, 0.0  ;;  %v714_v27 = vsel %vm467_vm0, %v421_v61, 0.0 }
  0xae   : > { %1586 = vtanh.f32 %v857_v32  ;;  %v491_v39 = vpop.xlane.xlu1 %490  ;;  %v488_v40 = vpop.xlane.xlu0 %487 }
  0xaf   : > { %v1577_v50 = vpop.eup %1576  ;;  %v860_v51 = vadd.f32 %v2286_v52, %v491_v39  ;;  %v859_v55 = vadd.f32 %v2286_v52, %v488_v40 }
  0xb0   : > { %v1579_v56 = vpop.eup %1578  ;;  %v1117_v57 = vmul.f32 %v1577_v50, %v2315_v37 }
  0xb1   : > { %v1115_v58 = vmul.f32 %v1579_v56, %v2315_v37  ;;  %1588 = vtanh.f32 %v860_v51  ;;  %706 = vadd.xlane.f32.xlu1 %v705_v38  ;;  %703 = vadd.xlane.f32.xlu0 %v702_v43  ;;  %v288_v38 = vld [vmem:[%s1999_s24 + $0x2b0] sm:$0xff]  ;;  %v720_v43 = vsel %vm467_vm0, %v423_v20, 0.0  ;;  %v291_v51 = vld [vmem:[%s1999_s24 + $0x2c8] sm:$0xff] }
  0xb2   : > { %v1245_v62 = vadd.f32 %v1117_v57, %v2002_v1  ;;  %1590 = vtanh.f32 %v859_v55  ;;  %v497_v63 = vpop.xlane.xlu1 %496  ;;  %v494_v4 = vpop.xlane.xlu0 %493  ;;  %v425_v50 = vmul.f32 %v1992_v0, %v288_v38  ;;  %v290_v55 = vld [vmem:[%s1999_s24 + $0x2c0] sm:$0xff] }
  0xb3   : > { %v1581_v12 = vpop.eup %1580  ;;  %v1243_v13 = vadd.f32 %v1115_v58, %v2005_v2  ;;  %v862_v14 = vadd.f32 %v2286_v52, %v497_v63  ;;  %v861_v15 = vadd.f32 %v2286_v52, %v494_v4  ;;  %v424_v2 = vmul.f32 %v1992_v0, %v287_v8 }
  0xb4   : > { %v1583_v16 = vpop.eup %1582  ;;  %1373 = vst.msk [vmem:[%s2331_s30 + $0x10] sm:$0xff] %vm467_vm0, %v1245_v62  ;;  %v1118_v1 = vmul.f32 %v1581_v12, %v2315_v37  ;;  %v427_v63 = vmul.f32 %v1992_v0, %v290_v55  ;;  %v729_v8 = vsel %vm467_vm0, %v426_v49, 0.0  ;;  %v726_v11 = vsel %vm467_vm0, %v425_v50, 0.0 }
  0xb5   : > { %1371 = vst.msk [vmem:[%s2331_s30] sm:$0xff] %vm467_vm0, %v1243_v13  ;;  %v1116_v19 = vmul.f32 %v1583_v16, %v2315_v37  ;;  %1592 = vtanh.f32 %v862_v14  ;;  %712 = vadd.xlane.f32.xlu1 %v711_v5  ;;  %709 = vadd.xlane.f32.xlu0 %v708_v6  ;;  %v293_v16 = vld [vmem:[%s1999_s24 + $0x2d8] sm:$0xff] }
  0xb6   : > { %v1246_v21 = vadd.f32 %v1118_v1, %v2008_v3  ;;  %1594 = vtanh.f32 %v861_v15  ;;  %v503_v22 = vpop.xlane.xlu1 %502  ;;  %v500_v25 = vpop.xlane.xlu0 %499  ;;  %v292_v1 = vld [vmem:[%s1999_s24 + $0x2d0] sm:$0xff]  ;;  %v732_v20 = vsel %vm467_vm0, %v427_v63, 0.0 }
  0xb7   : > { %v1585_v28 = vpop.eup %1584  ;;  %v1244_v31 = vadd.f32 %v1116_v19, %v2017_v7  ;;  %v864_v32 = vadd.f32 %v2286_v52, %v503_v22  ;;  %v863_v33 = vadd.f32 %v2286_v52, %v500_v25  ;;  %v723_v7 = vsel %vm467_vm0, %v424_v2, 0.0 }
  0xb8   : > { %v1587_v39 = vpop.eup %1586  ;;  %1374 = vst.msk [vmem:[%s2331_s30 + $0x18] sm:$0xff] %vm467_vm0, %v1246_v21  ;;  %v1120_v3 = vmul.f32 %v1585_v28, %v2315_v37  ;;  %v295_v28 = vld [vmem:[%s1999_s24 + $0x2e8] sm:$0xff] }
  0xb9   : > { %1372 = vst.msk [vmem:[%s2331_s30 + $0x8] sm:$0xff] %vm467_vm0, %v1244_v31  ;;  %v1119_v40 = vmul.f32 %v1587_v39, %v2315_v37  ;;  %1596 = vtanh.f32 %v864_v32  ;;  %718 = vadd.xlane.f32.xlu1 %v717_v26  ;;  %715 = vadd.xlane.f32.xlu0 %v714_v27  ;;  %v430_v26 = vmul.f32 %v1992_v0, %v293_v16  ;;  %v294_v31 = vld [vmem:[%s1999_s24 + $0x2e0] sm:$0xff] }
  0xba   : > { %v1248_v44 = vadd.f32 %v1120_v3, %v2022_v9  ;;  %1598 = vtanh.f32 %v863_v33  ;;  %v509_v45 = vpop.xlane.xlu1 %508  ;;  %v506_v46 = vpop.xlane.xlu0 %505  ;;  %v429_v27 = vmul.f32 %v1992_v0, %v292_v1 }
  0xbb   : > { %v1589_v56 = vpop.eup %1588  ;;  %v1247_v57 = vadd.f32 %v1119_v40, %v2025_v10  ;;  %v866_v58 = vadd.f32 %v2286_v52, %v509_v45  ;;  %v865_v60 = vadd.f32 %v2286_v52, %v506_v46  ;;  %v428_v10 = vmul.f32 %v1992_v0, %v291_v51 }
  0xbc   : > { %v1591_v61 = vpop.eup %1590  ;;  %1376 = vst.msk [vmem:[%s2331_s30 + $0x28] sm:$0xff] %vm467_vm0, %v1248_v44  ;;  %v1122_v9 = vmul.f32 %v1589_v56, %v2315_v37  ;;  %v431_v40 = vmul.f32 %v1992_v0, %v294_v31  ;;  %v741_v45 = vsel %vm467_vm0, %v430_v26, 0.0  ;;  %v738_v46 = vsel %vm467_vm0, %v429_v27, 0.0  ;;  %v297_v56 = vld [vmem:[%s1999_s24 + $0x2f8] sm:$0xff]  ;;  %v300_v27 = vld [vmem:[%s1999_s24 + $0x310] sm:$0xff] }
  0xbd   : > { %1375 = vst.msk [vmem:[%s2331_s30 + $0x20] sm:$0xff] %vm467_vm0, %v1247_v57  ;;  %v1121_v62 = vmul.f32 %v1591_v61, %v2315_v37  ;;  %1600 = vtanh.f32 %v866_v58  ;;  %724 = vadd.xlane.f32.xlu1 %v723_v7  ;;  %721 = vadd.xlane.f32.xlu0 %v720_v43  ;;  %v296_v57 = vld [vmem:[%s1999_s24 + $0x2f0] sm:$0xff]  ;;  %v434_v63 = vmul.f32 %v1992_v0, %v297_v56  ;;  %v301_v26 = vld [vmem:[%s1999_s24 + $0x318] sm:$0xff] }
  0xbe   : > { %v1250_v4 = vadd.f32 %v1122_v9, %v2036_v17  ;;  %1602 = vtanh.f32 %v865_v60  ;;  %v515_v5 = vpop.xlane.xlu1 %514  ;;  %v512_v6 = vpop.xlane.xlu0 %511  ;;  %v744_v61 = vsel %vm467_vm0, %v431_v40, 0.0 }
  0xbf   : > { %v1593_v12 = vpop.eup %1592  ;;  %v1249_v13 = vadd.f32 %v1121_v62, %v2039_v18  ;;  %v868_v14 = vadd.f32 %v2286_v52, %v515_v5  ;;  %v867_v15 = vadd.f32 %v2286_v52, %v512_v6  ;;  %v735_v18 = vsel %vm467_vm0, %v428_v10, 0.0  ;;  %v299_v5 = vld [vmem:[%s1999_s24 + $0x308] sm:$0xff]  ;;  %v298_v6 = vld [vmem:[%s1999_s24 + $0x300] sm:$0xff] }
  0xc0   : > { %v1595_v19 = vpop.eup %1594  ;;  %1378 = vst.msk [vmem:[%s2331_s30 + $0x38] sm:$0xff] %vm467_vm0, %v1250_v4  ;;  %v1124_v17 = vmul.f32 %v1593_v12, %v2315_v37  ;;  %v433_v4 = vmul.f32 %v1992_v0, %v296_v57 }
  0xc1   : > { %1377 = vst.msk [vmem:[%s2331_s30 + $0x30] sm:$0xff] %vm467_vm0, %v1249_v13  ;;  %v1123_v2 = vmul.f32 %v1595_v19, %v2315_v37  ;;  %1604 = vtanh.f32 %v868_v14  ;;  %730 = vadd.xlane.f32.xlu1 %v729_v8  ;;  %727 = vadd.xlane.f32.xlu0 %v726_v11 }
  0xc2   : > { %v1252_v21 = vadd.f32 %v1124_v17, %v2048_v23  ;;  %1606 = vtanh.f32 %v867_v15  ;;  %v521_v22 = vpop.xlane.xlu1 %520  ;;  %v518_v25 = vpop.xlane.xlu0 %517 }
  0xc3   : > { %v1597_v32 = vpop.eup %1596  ;;  %v1251_v33 = vadd.f32 %v1123_v2, %v2051_v24  ;;  %v870_v34 = vadd.f32 %v2286_v52, %v521_v22  ;;  %v869_v38 = vadd.f32 %v2286_v52, %v518_v25  ;;  %v432_v24 = vmul.f32 %v1992_v0, %v295_v28  ;;  %v2449_v0 = vld [vmem:[%s3111_s2] ss:$0 sm:$0xff] }
  0xc4   : > { %v1599_v39 = vpop.eup %1598  ;;  %1380 = vst.msk [vmem:[%s2331_s30 + $0x48] sm:$0xff] %vm467_vm0, %v1252_v21  ;;  %v1126_v23 = vmul.f32 %v1597_v32, %v2315_v37  ;;  %v435_v16 = vmul.f32 %v2449_v0, %v298_v6  ;;  %v753_v2 = vsel %vm467_vm0, %v434_v63, 0.0 }
  0xc5   : > { %1379 = vst.msk [vmem:[%s2331_s30 + $0x40] sm:$0xff] %vm467_vm0, %v1251_v33  ;;  %v1125_v3 = vmul.f32 %v1599_v39, %v2315_v37  ;;  %1608 = vtanh.f32 %v870_v34  ;;  %736 = vadd.xlane.f32.xlu1 %v735_v18  ;;  %733 = vadd.xlane.f32.xlu0 %v732_v20  ;;  %v750_v18 = vsel %vm467_vm0, %v433_v4, 0.0  ;;  %v438_v39 = vmul.f32 %v2449_v0, %v301_v26 }
  0xc6   : > { %v1254_v7 = vadd.f32 %v1126_v23, %v2060_v29  ;;  %1610 = vtanh.f32 %v869_v38  ;;  %v527_v43 = vpop.xlane.xlu1 %526  ;;  %v524_v44 = vpop.xlane.xlu0 %523  ;;  %v756_v32 = vsel %vm467_vm0, %v435_v16, 0.0  ;;  %v437_v23 = vmul.f32 %v2449_v0, %v300_v27 }
  0xc7   : > { %v1601_v49 = vpop.eup %1600  ;;  %v1253_v50 = vadd.f32 %v1125_v3, %v2063_v30  ;;  %v872_v51 = vadd.f32 %v2286_v52, %v527_v43  ;;  %v871_v55 = vadd.f32 %v2286_v52, %v524_v44  ;;  %v747_v30 = vsel %vm467_vm0, %v432_v24, 0.0  ;;  %v303_v3 = vld [vmem:[%s1999_s24 + $0x328] sm:$0xff]  ;;  %v302_v24 = vld [vmem:[%s1999_s24 + $0x320] sm:$0xff] }
  0xc8   : > { %v1603_v58 = vpop.eup %1602  ;;  %1382 = vst.msk [vmem:[%s2331_s30 + $0x58] sm:$0xff] %vm467_vm0, %v1254_v7  ;;  %v1128_v29 = vmul.f32 %v1601_v49, %v2315_v37  ;;  %v439_v49 = vmul.f32 %v2449_v0, %v302_v24  ;;  %v765_v56 = vsel %vm467_vm0, %v438_v39, 0.0  ;;  %v762_v57 = vsel %vm467_vm0, %v437_v23, 0.0  ;;  %v1836_v24 = vld [vmem:[%s1999_s24 + $0xc8] sm:$0xff] }
  0xc9   : > { %1381 = vst.msk [vmem:[%s2331_s30 + $0x50] sm:$0xff] %vm467_vm0, %v1253_v50  ;;  %v1127_v60 = vmul.f32 %v1603_v58, %v2315_v37  ;;  %1612 = vtanh.f32 %v872_v51  ;;  %742 = vadd.xlane.f32.xlu1 %v741_v45  ;;  %739 = vadd.xlane.f32.xlu0 %v738_v46 }
  0xca   : > { %v1256_v9 = vadd.f32 %v1128_v29, %v2072_v35  ;;  %1614 = vtanh.f32 %v871_v55  ;;  %v533_v62 = vpop.xlane.xlu1 %532  ;;  %v530_v10 = vpop.xlane.xlu0 %529  ;;  %v768_v63 = vsel %vm467_vm0, %v439_v49, 0.0  ;;  %v1837_v49 = vld [vmem:[%s1999_s24 + $0xc0] sm:$0xff] }
  0xcb   : > { %v1605_v8 = vpop.eup %1604  ;;  %v1255_v11 = vadd.f32 %v1127_v60, %v2075_v36  ;;  %v874_v12 = vadd.f32 %v2286_v52, %v533_v62  ;;  %v873_v13 = vadd.f32 %v2286_v52, %v530_v10  ;;  %v436_v36 = vmul.f32 %v2449_v0, %v299_v5 }
  0xcc   : > { %v1607_v14 = vpop.eup %1606  ;;  %1384 = vst.msk [vmem:[%s2331_s30 + $0x68] sm:$0xff] %vm467_vm0, %v1256_v9  ;;  %v1130_v35 = vmul.f32 %v1605_v8, %v2315_v37  ;;  %v304_v9 = vld [vmem:[%s1999_s24 + $0x330] sm:$0xff] }
  0xcd   : > { %1383 = vst.msk [vmem:[%s2331_s30 + $0x60] sm:$0xff] %vm467_vm0, %v1255_v11  ;;  %v1129_v15 = vmul.f32 %v1607_v14, %v2315_v37  ;;  %1616 = vtanh.f32 %v874_v12  ;;  %748 = vadd.xlane.f32.xlu1 %v747_v30  ;;  %745 = vadd.xlane.f32.xlu0 %v744_v61  ;;  %v305_v61 = vld [vmem:[%s1999_s24 + $0x338] sm:$0xff]  ;;  %v441_v11 = vmul.f32 %v2449_v0, %v304_v9  ;;  %v307_v12 = vld [vmem:[%s1999_s24 + $0x348] sm:$0xff] }
  0xce   : > { %v1258_v1 = vadd.f32 %v1130_v35, %v2084_v41  ;;  %1618 = vtanh.f32 %v873_v13  ;;  %v539_v19 = vpop.xlane.xlu1 %538  ;;  %v536_v17 = vpop.xlane.xlu0 %535  ;;  %v442_v8 = vmul.f32 %v2449_v0, %v305_v61  ;;  %v306_v13 = vld [vmem:[%s1999_s24 + $0x340] sm:$0xff] }
  0xcf   : > { %v1609_v20 = vpop.eup %1608  ;;  %v1257_v21 = vadd.f32 %v1129_v15, %v2087_v42  ;;  %v876_v22 = vadd.f32 %v2286_v52, %v539_v19  ;;  %v875_v25 = vadd.f32 %v2286_v52, %v536_v17  ;;  %v759_v42 = vsel %vm467_vm0, %v436_v36, 0.0  ;;  %v1833_v35 = vld [vmem:[%s1999_s24 + $0xa0] sm:$0xff] }
  0xd0   : > { %v1611_v28 = vpop.eup %1610  ;;  %1386 = vst.msk [vmem:[%s2331_s30 + $0x78] sm:$0xff] %vm467_vm0, %v1258_v1  ;;  %v1132_v41 = vmul.f32 %v1609_v20, %v2315_v37  ;;  %v444_v17 = vmul.f32 %v2449_v0, %v307_v12  ;;  %v774_v26 = vsel %vm467_vm0, %v441_v11, 0.0  ;;  %v312_v11 = vld [vmem:[%s1999_s24 + $0x370] sm:$0xff] }
  0xd1   : > { %1385 = vst.msk [vmem:[%s2331_s30 + $0x70] sm:$0xff] %vm467_vm0, %v1257_v21  ;;  %v1131_v31 = vmul.f32 %v1611_v28, %v2315_v37  ;;  %1620 = vtanh.f32 %v876_v22  ;;  %754 = vadd.xlane.f32.xlu1 %v753_v2  ;;  %751 = vadd.xlane.f32.xlu0 %v750_v18  ;;  %v443_v2 = vmul.f32 %v2449_v0, %v306_v13  ;;  %v1834_v18 = vld [vmem:[%s1999_s24 + $0xb8] sm:$0xff]  ;;  %v1835_v28 = vld [vmem:[%s1999_s24 + $0xb0] sm:$0xff] }
  0xd2   : > { %v1260_v33 = vadd.f32 %v1132_v41, %v2096_v47  ;;  %1622 = vtanh.f32 %v875_v25  ;;  %v545_v34 = vpop.xlane.xlu1 %544  ;;  %v542_v38 = vpop.xlane.xlu0 %541  ;;  %v777_v25 = vsel %vm467_vm0, %v442_v8, 0.0  ;;  %v783_v23 = vsel %vm467_vm0, %v444_v17, 0.0  ;;  %v313_v8 = vld [vmem:[%s1999_s24 + $0x378] sm:$0xff] }
  0xd3   : > { %v1613_v40 = vpop.eup %1612  ;;  %v1259_v7 = vadd.f32 %v1131_v31, %v2099_v48  ;;  %v878_v43 = vadd.f32 %v2286_v52, %v545_v34  ;;  %v877_v44 = vadd.f32 %v2286_v52, %v542_v38  ;;  %v440_v48 = vmul.f32 %v2449_v0, %v303_v3 }
  0xd4   : > { %v1615_v45 = vpop.eup %1614  ;;  %1388 = vst.msk [vmem:[%s2331_s30 + $0x88] sm:$0xff] %vm467_vm0, %v1260_v33  ;;  %v1134_v47 = vmul.f32 %v1613_v40, %v2315_v37  ;;  %v308_v33 = vld [vmem:[%s1999_s24 + $0x350] sm:$0xff]  ;;  %v780_v3 = vsel %vm467_vm0, %v443_v2, 0.0  ;;  %v449_v17 = vmul.f32 %v2449_v0, %v312_v11  ;;  %v315_v2 = vld [vmem:[%s1999_s24 + $0x388] sm:$0xff] }
  0xd5   : > { %1387 = vst.msk [vmem:[%s2331_s30 + $0x80] sm:$0xff] %vm467_vm0, %v1259_v7  ;;  %v1133_v46 = vmul.f32 %v1615_v45, %v2315_v37  ;;  %1624 = vtanh.f32 %v878_v43  ;;  %760 = vadd.xlane.f32.xlu1 %v759_v42  ;;  %757 = vadd.xlane.f32.xlu0 %v756_v32  ;;  %v309_v32 = vld [vmem:[%s1999_s24 + $0x358] sm:$0xff]  ;;  %v445_v45 = vmul.f32 %v2449_v0, %v308_v33 }
  0xd6   : > { %v1262_v50 = vadd.f32 %v1134_v47, %v2108_v53  ;;  %1626 = vtanh.f32 %v877_v44  ;;  %v551_v51 = vpop.xlane.xlu1 %550  ;;  %v548_v55 = vpop.xlane.xlu0 %547  ;;  %v446_v44 = vmul.f32 %v2449_v0, %v309_v32  ;;  %v311_v47 = vld [vmem:[%s1999_s24 + $0x368] sm:$0xff]  ;;  %v1842_v32 = vld [vmem:[%s1999_s24 + $0xf8] sm:$0xff] }
  0xd7   : > { %v1617_v58 = vpop.eup %1616  ;;  %v1261_v29 = vadd.f32 %v1133_v46, %v2111_v54  ;;  %v880_v60 = vadd.f32 %v2286_v52, %v551_v51  ;;  %v879_v30 = vadd.f32 %v2286_v52, %v548_v55  ;;  %v771_v54 = vsel %vm467_vm0, %v440_v48, 0.0  ;;  %v310_v46 = vld [vmem:[%s1999_s24 + $0x360] sm:$0xff] }
  0xd8   : > { %v1619_v62 = vpop.eup %1618  ;;  %1390 = vst.msk [vmem:[%s2331_s30 + $0x98] sm:$0xff] %vm467_vm0, %v1262_v50  ;;  %v1136_v53 = vmul.f32 %v1617_v58, %v2315_v37 }
  0xd9   : > { %1389 = vst.msk [vmem:[%s2331_s30 + $0x90] sm:$0xff] %vm467_vm0, %v1261_v29  ;;  %v1135_v10 = vmul.f32 %v1619_v62, %v2315_v37  ;;  %1628 = vtanh.f32 %v880_v60  ;;  %766 = vadd.xlane.f32.xlu1 %v765_v56  ;;  %763 = vadd.xlane.f32.xlu0 %v762_v57  ;;  %v448_v29 = vmul.f32 %v2449_v0, %v311_v47 }
  0xda   : > { %v1264_v4 = vadd.f32 %v1136_v53, %v2120_v59  ;;  %1630 = vtanh.f32 %v879_v30  ;;  %v557_v5 = vpop.xlane.xlu1 %556  ;;  %v554_v6 = vpop.xlane.xlu0 %553  ;;  %v447_v60 = vmul.f32 %v2449_v0, %v310_v46  ;;  %v1838_v30 = vld [vmem:[%s1999_s24 + $0xd8] sm:$0xff]  ;;  %v789_v53 = vsel %vm467_vm0, %v446_v44, 0.0 }
  0xdb   : > { %v1621_v14 = vpop.eup %1620  ;;  %v1263_v15 = vadd.f32 %v1833_v35, %v1135_v10  ;;  %v882_v36 = vadd.f32 %v2286_v52, %v557_v5  ;;  %v881_v16 = vadd.f32 %v2286_v52, %v554_v6  ;;  %v786_v10 = vsel %vm467_vm0, %v445_v45, 0.0  ;;  %v317_v44 = vld [vmem:[%s1999_s24 + $0x398] sm:$0xff]  ;;  %v316_v45 = vld [vmem:[%s1999_s24 + $0x390] sm:$0xff] }
  0xdc   : > { %v1623_v1 = vpop.eup %1622  ;;  %1392 = vst.msk [vmem:[%s2331_s30 + $0xa8] sm:$0xff] %vm467_vm0, %v1264_v4  ;;  %v1138_v59 = vmul.f32 %v1621_v14, %v2315_v37  ;;  %v795_v35 = vsel %vm467_vm0, %v448_v29, 0.0  ;;  %v453_v29 = vmul.f32 %v2449_v0, %v316_v45 }
  0xdd   : > { %1391 = vst.msk [vmem:[%s2331_s30 + $0xa0] sm:$0xff] %vm467_vm0, %v1263_v15  ;;  %v1137_v19 = vmul.f32 %v1623_v1, %v2315_v37  ;;  %1632 = vtanh.f32 %v882_v36  ;;  %772 = vadd.xlane.f32.xlu1 %v771_v54  ;;  %769 = vadd.xlane.f32.xlu0 %v768_v63  ;;  %v1839_v63 = vld [vmem:[%s1999_s24 + $0xd0] sm:$0xff]  ;;  %v792_v15 = vsel %vm467_vm0, %v447_v60, 0.0  ;;  %v1840_v36 = vld [vmem:[%s1999_s24 + $0xe8] sm:$0xff] }
  0xde   : > { %v1266_v20 = vadd.f32 %v1834_v18, %v1138_v59  ;;  %1634 = vtanh.f32 %v881_v16  ;;  %v563_v21 = vpop.xlane.xlu1 %562  ;;  %v560_v22 = vpop.xlane.xlu0 %559  ;;  %v314_v18 = vld [vmem:[%s1999_s24 + $0x380] sm:$0xff]  ;;  %v319_v60 = vld [vmem:[%s1999_s24 + $0x3a8] sm:$0xff] }
  0xdf   : > { %v1625_v27 = vpop.eup %1624  ;;  %v1265_v41 = vadd.f32 %v1835_v28, %v1137_v19  ;;  %v884_v31 = vadd.f32 %v2286_v52, %v563_v21  ;;  %v883_v42 = vadd.f32 %v2286_v52, %v560_v22  ;;  %v450_v19 = vmul.f32 %v2449_v0, %v313_v8  ;;  %v1841_v21 = vld [vmem:[%s1999_s24 + $0xe0] sm:$0xff]  ;;  %v1846_v8 = vld [vmem:[%s1999_s24 + $0x118] sm:$0xff] }
  0xe0   : > { %v1627_v34 = vpop.eup %1626  ;;  %1394 = vst.msk [vmem:[%s2331_s30 + $0xb8] sm:$0xff] %vm467_vm0, %v1266_v20  ;;  %v1140_v38 = vmul.f32 %v1625_v27, %v2315_v37 }
  0xe1   : > { %1393 = vst.msk [vmem:[%s2331_s30 + $0xb0] sm:$0xff] %vm467_vm0, %v1265_v41  ;;  %v1139_v39 = vmul.f32 %v1627_v34, %v2315_v37  ;;  %1636 = vtanh.f32 %v884_v31  ;;  %778 = vadd.xlane.f32.xlu1 %v777_v25  ;;  %775 = vadd.xlane.f32.xlu0 %v774_v26  ;;  %v452_v31 = vmul.f32 %v2449_v0, %v315_v2 }
  0xe2   : > { %v1268_v40 = vadd.f32 %v1836_v24, %v1140_v38  ;;  %1638 = vtanh.f32 %v883_v42  ;;  %v569_v7 = vpop.xlane.xlu1 %568  ;;  %v566_v43 = vpop.xlane.xlu0 %565  ;;  %v451_v42 = vmul.f32 %v2449_v0, %v314_v18  ;;  %v1843_v24 = vld [vmem:[%s1999_s24 + $0xf0] sm:$0xff] }
  0xe3   : > { %v1629_v48 = vpop.eup %1628  ;;  %v1267_v50 = vadd.f32 %v1837_v49, %v1139_v39  ;;  %v886_v51 = vadd.f32 %v2286_v52, %v569_v7  ;;  %v885_v55 = vadd.f32 %v2286_v52, %v566_v43  ;;  %v801_v39 = vsel %vm467_vm0, %v450_v19, 0.0  ;;  %v321_v19 = vld [vmem:[%s1999_s24 + $0x3b8] sm:$0xff] }
  0xe4   : > { %v1631_v56 = vpop.eup %1630  ;;  %1396 = vst.msk [vmem:[%s2331_s30 + $0xc8] sm:$0xff] %vm467_vm0, %v1268_v40  ;;  %v1142_v57 = vmul.f32 %v1629_v48, %v2315_v37  ;;  %v807_v49 = vsel %vm467_vm0, %v452_v31, 0.0 }
  0xe5   : > { %1395 = vst.msk [vmem:[%s2331_s30 + $0xc0] sm:$0xff] %vm467_vm0, %v1267_v50  ;;  %v1141_v58 = vmul.f32 %v1631_v56, %v2315_v37  ;;  %1640 = vtanh.f32 %v886_v51  ;;  %784 = vadd.xlane.f32.xlu1 %v783_v23  ;;  %781 = vadd.xlane.f32.xlu0 %v780_v3  ;;  %v798_v23 = vsel %vm467_vm0, %v449_v17, 0.0  ;;  %v804_v50 = vsel %vm467_vm0, %v451_v42, 0.0  ;;  %v1844_v51 = vld [vmem:[%s1999_s24 + $0x108] sm:$0xff]  ;;  %v320_v17 = vld [vmem:[%s1999_s24 + $0x3b0] sm:$0xff] }
  0xe6   : > { %v1270_v61 = vadd.f32 %v1838_v30, %v1142_v57  ;;  %1642 = vtanh.f32 %v885_v55  ;;  %v575_v9 = vpop.xlane.xlu1 %574  ;;  %v572_v62 = vpop.xlane.xlu0 %571  ;;  %v318_v30 = vld [vmem:[%s1999_s24 + $0x3a0] sm:$0xff]  ;;  %v457_v31 = vmul.f32 %v2449_v0, %v320_v17  ;;  %v323_v42 = vld [vmem:[%s1999_s24 + $0x3c8] sm:$0xff] }
  0xe7   : > { %v1633_v54 = vpop.eup %1632  ;;  %v1269_v4 = vadd.f32 %v1839_v63, %v1141_v58  ;;  %v888_v5 = vadd.f32 %v2286_v52, %v575_v9  ;;  %v887_v6 = vadd.f32 %v2286_v52, %v572_v62  ;;  %v454_v58 = vmul.f32 %v2449_v0, %v317_v44  ;;  %v1845_v9 = vld [vmem:[%s1999_s24 + $0x100] sm:$0xff]  ;;  %v1850_v44 = vld [vmem:[%s1999_s24 + $0x138] sm:$0xff] }
  0xe8   : > { %v1635_v12 = vpop.eup %1634  ;;  %1398 = vst.msk [vmem:[%s2331_s30 + $0xd8] sm:$0xff] %vm467_vm0, %v1270_v61  ;;  %v1144_v13 = vmul.f32 %v1633_v54, %v2315_v37 }
  0xe9   : > { %1397 = vst.msk [vmem:[%s2331_s30 + $0xd0] sm:$0xff] %vm467_vm0, %v1269_v4  ;;  %v1143_v14 = vmul.f32 %v1635_v12, %v2315_v37  ;;  %1644 = vtanh.f32 %v888_v5  ;;  %790 = vadd.xlane.f32.xlu1 %v789_v53  ;;  %787 = vadd.xlane.f32.xlu0 %v786_v10  ;;  %v456_v5 = vmul.f32 %v2449_v0, %v319_v60 }
  0xea   : > { %v1272_v16 = vadd.f32 %v1840_v36, %v1144_v13  ;;  %1646 = vtanh.f32 %v887_v6  ;;  %v581_v1 = vpop.xlane.xlu1 %580  ;;  %v578_v59 = vpop.xlane.xlu0 %577  ;;  %v455_v6 = vmul.f32 %v2449_v0, %v318_v30  ;;  %v1847_v36 = vld [vmem:[%s1999_s24 + $0x110] sm:$0xff] }
  0xeb   : > { %v1637_v20 = vpop.eup %1636  ;;  %v1271_v22 = vadd.f32 %v1841_v21, %v1143_v14  ;;  %v890_v25 = vadd.f32 %v2286_v52, %v581_v1  ;;  %v889_v26 = vadd.f32 %v2286_v52, %v578_v59  ;;  %v813_v14 = vsel %vm467_vm0, %v454_v58, 0.0  ;;  %v325_v58 = vld [vmem:[%s1999_s24 + $0x3d8] sm:$0xff] }
  0xec   : > { %v1639_v27 = vpop.eup %1638  ;;  %1400 = vst.msk [vmem:[%s2331_s30 + $0xe8] sm:$0xff] %vm467_vm0, %v1272_v16  ;;  %v1146_v28 = vmul.f32 %v1637_v20, %v2315_v37  ;;  %v819_v21 = vsel %vm467_vm0, %v456_v5, 0.0 }
  0xed   : > { %1399 = vst.msk [vmem:[%s2331_s30 + $0xe0] sm:$0xff] %vm467_vm0, %v1271_v22  ;;  %v1145_v41 = vmul.f32 %v1639_v27, %v2315_v37  ;;  %1648 = vtanh.f32 %v890_v25  ;;  %796 = vadd.xlane.f32.xlu1 %v795_v35  ;;  %793 = vadd.xlane.f32.xlu0 %v792_v15  ;;  %v810_v35 = vsel %vm467_vm0, %v453_v29, 0.0  ;;  %v816_v22 = vsel %vm467_vm0, %v455_v6, 0.0  ;;  %v1848_v25 = vld [vmem:[%s1999_s24 + $0x128] sm:$0xff]  ;;  %v324_v29 = vld [vmem:[%s1999_s24 + $0x3d0] sm:$0xff] }
  0xee   : > { %v1274_v33 = vadd.f32 %v1842_v32, %v1146_v28  ;;  %1650 = vtanh.f32 %v889_v26  ;;  %v587_v34 = vpop.xlane.xlu1 %586  ;;  %v584_v38 = vpop.xlane.xlu0 %583  ;;  %v322_v32 = vld [vmem:[%s1999_s24 + $0x3c0] sm:$0xff]  ;;  %v461_v5 = vmul.f32 %v2449_v0, %v324_v29  ;;  %v327_v6 = vld [vmem:[%s1999_s24 + $0x3e8] sm:$0xff] }
  0xef   : > { %v1641_v3 = vpop.eup %1640  ;;  %v1273_v40 = vadd.f32 %v1843_v24, %v1145_v41  ;;  %v892_v7 = vadd.f32 %v2286_v52, %v587_v34  ;;  %v891_v43 = vadd.f32 %v2286_v52, %v584_v38  ;;  %v458_v41 = vmul.f32 %v2449_v0, %v321_v19  ;;  %v1849_v34 = vld [vmem:[%s1999_s24 + $0x120] sm:$0xff]  ;;  %v1854_v19 = vld [vmem:[%s1999_s24 + $0x158] sm:$0xff] }
  0xf0   : > { %v1643_v47 = vpop.eup %1642  ;;  %1402 = vst.msk [vmem:[%s2331_s30 + $0xf8] sm:$0xff] %vm467_vm0, %v1274_v33  ;;  %v1148_v46 = vmul.f32 %v1641_v3, %v2315_v37 }
  0xf1   : > { %1401 = vst.msk [vmem:[%s2331_s30 + $0xf0] sm:$0xff] %vm467_vm0, %v1273_v40  ;;  %v1147_v48 = vmul.f32 %v1643_v47, %v2315_v37  ;;  %1652 = vtanh.f32 %v892_v7  ;;  %802 = vadd.xlane.f32.xlu1 %v801_v39  ;;  %799 = vadd.xlane.f32.xlu0 %v798_v23  ;;  %v460_v7 = vmul.f32 %v2449_v0, %v323_v42 }
  0xf2   : > { %v1276_v55 = vadd.f32 %v1844_v51, %v1148_v46  ;;  %1654 = vtanh.f32 %v891_v43  ;;  %v593_v56 = vpop.xlane.xlu1 %592  ;;  %v590_v57 = vpop.xlane.xlu0 %589  ;;  %v459_v43 = vmul.f32 %v2449_v0, %v322_v32  ;;  %v1851_v51 = vld [vmem:[%s1999_s24 + $0x130] sm:$0xff] }
  0xf3   : > { %v1645_v61 = vpop.eup %1644  ;;  %v1275_v62 = vadd.f32 %v1845_v9, %v1147_v48  ;;  %v894_v53 = vadd.f32 %v2286_v52, %v593_v56  ;;  %v893_v10 = vadd.f32 %v2286_v52, %v590_v57  ;;  %v825_v48 = vsel %vm467_vm0, %v458_v41, 0.0  ;;  %v329_v41 = vld [vmem:[%s1999_s24 + $0x3f8] sm:$0xff] }
  0xf4   : > { %v1647_v54 = vpop.eup %1646  ;;  %1404 = vst.msk [vmem:[%s2331_s30 + $0x108] sm:$0xff] %vm467_vm0, %v1276_v55  ;;  %v1150_v63 = vmul.f32 %v1645_v61, %v2315_v37  ;;  %v831_v9 = vsel %vm467_vm0, %v460_v7, 0.0 }
  0xf5   : > { %1403 = vst.msk [vmem:[%s2331_s30 + $0x100] sm:$0xff] %vm467_vm0, %v1275_v62  ;;  %v1149_v4 = vmul.f32 %v1647_v54, %v2315_v37  ;;  %1656 = vtanh.f32 %v894_v53  ;;  %808 = vadd.xlane.f32.xlu1 %v807_v49  ;;  %805 = vadd.xlane.f32.xlu0 %v804_v50  ;;  %v822_v49 = vsel %vm467_vm0, %v457_v31, 0.0  ;;  %v828_v62 = vsel %vm467_vm0, %v459_v43, 0.0  ;;  %v1852_v53 = vld [vmem:[%s1999_s24 + $0x148] sm:$0xff]  ;;  %v328_v31 = vld [vmem:[%s1999_s24 + $0x3f0] sm:$0xff]  ;;  %v1857_v43 = vld [vmem:[%s1999_s24 + $0x160] sm:$0xff] }
  0xf6   : > { %v1278_v11 = vadd.f32 %v1846_v8, %v1150_v63  ;;  %1658 = vtanh.f32 %v893_v10  ;;  %v599_v12 = vpop.xlane.xlu1 %598  ;;  %v596_v13 = vpop.xlane.xlu0 %595  ;;  %v326_v8 = vld [vmem:[%s1999_s24 + $0x3e0] sm:$0xff]  ;;  %v465_v7 = vmul.f32 %v2449_v0, %v328_v31 }
  0xf7   : > { %v1649_v15 = vpop.eup %1648  ;;  %v1277_v16 = vadd.f32 %v1847_v36, %v1149_v4  ;;  %v896_v1 = vadd.f32 %v2286_v52, %v599_v12  ;;  %v895_v59 = vadd.f32 %v2286_v52, %v596_v13  ;;  %v462_v4 = vmul.f32 %v2449_v0, %v325_v58  ;;  %v1853_v12 = vld [vmem:[%s1999_s24 + $0x140] sm:$0xff] }
  0xf8   : > { %v1651_v2 = vpop.eup %1650  ;;  %1406 = vst.msk [vmem:[%s2331_s30 + $0x118] sm:$0xff] %vm467_vm0, %v1278_v11  ;;  %v1152_v18 = vmul.f32 %v1649_v15, %v2315_v37  ;;  %v846_v58 = vsel %vm467_vm0, %v465_v7, 0.0 }
  0xf9   : > { %1405 = vst.msk [vmem:[%s2331_s30 + $0x110] sm:$0xff] %vm467_vm0, %v1277_v16  ;;  %v1151_v20 = vmul.f32 %v1651_v2, %v2315_v37  ;;  %1660 = vtanh.f32 %v896_v1  ;;  %814 = vadd.xlane.f32.xlu1 %v813_v14  ;;  %811 = vadd.xlane.f32.xlu0 %v810_v35  ;;  %v464_v1 = vmul.f32 %v2449_v0, %v327_v6 }
  0xfa   : > { %v1280_v26 = vadd.f32 %v1848_v25, %v1152_v18  ;;  %1662 = vtanh.f32 %v895_v59  ;;  %v605_v27 = vpop.xlane.xlu1 %604  ;;  %v602_v28 = vpop.xlane.xlu0 %601  ;;  %v463_v59 = vmul.f32 %v2449_v0, %v326_v8  ;;  %v1855_v25 = vld [vmem:[%s1999_s24 + $0x150] sm:$0xff]  ;;  %v1862_v8 = vld [vmem:[%s1999_s24 + $0x180] sm:$0xff] }
  0xfb   : > { %v1653_v33 = vpop.eup %1652  ;;  %v1279_v38 = vadd.f32 %v1849_v34, %v1151_v20  ;;  %v898_v39 = vadd.f32 %v2286_v52, %v605_v27  ;;  %v897_v23 = vadd.f32 %v2286_v52, %v602_v28  ;;  %v837_v20 = vsel %vm467_vm0, %v462_v4, 0.0 }
  0xfc   : > { %v1655_v3 = vpop.eup %1654  ;;  %1408 = vst.msk [vmem:[%s2331_s30 + $0x128] sm:$0xff] %vm467_vm0, %v1280_v26  ;;  %v1154_v24 = vmul.f32 %v1653_v33, %v2315_v37  ;;  %v843_v34 = vsel %vm467_vm0, %v464_v1, 0.0 }
  0xfd   : > { %1407 = vst.msk [vmem:[%s2331_s30 + $0x120] sm:$0xff] %vm467_vm0, %v1279_v38  ;;  %v1153_v40 = vmul.f32 %v1655_v3, %v2315_v37  ;;  %1664 = vtanh.f32 %v898_v39  ;;  %820 = vadd.xlane.f32.xlu1 %v819_v21  ;;  %817 = vadd.xlane.f32.xlu0 %v816_v22  ;;  %v834_v21 = vsel %vm467_vm0, %v461_v5, 0.0  ;;  %v840_v38 = vsel %vm467_vm0, %v463_v59, 0.0  ;;  %v1856_v39 = vld [vmem:[%s1999_s24 + $0x168] sm:$0xff] }
  0xfe   : > { %v1282_v45 = vadd.f32 %v1850_v44, %v1154_v24  ;;  %1666 = vtanh.f32 %v897_v23  ;;  %v611_v47 = vpop.xlane.xlu1 %610  ;;  %v608_v46 = vpop.xlane.xlu0 %607 }
  0xff   : > { %v1657_v50 = vpop.eup %1656  ;;  %v1281_v55 = vadd.f32 %v1851_v51, %v1153_v40  ;;  %v900_v56 = vadd.f32 %v2286_v52, %v611_v47  ;;  %v899_v57 = vadd.f32 %v2286_v52, %v608_v46  ;;  %v466_v40 = vmul.f32 %v2449_v0, %v329_v41 }
 0x100   : > { %v1659_v60 = vpop.eup %1658  ;;  %1410 = vst.msk [vmem:[%s2331_s30 + $0x138] sm:$0xff] %vm467_vm0, %v1282_v45  ;;  %v1156_v30 = vmul.f32 %v1657_v50, %v2315_v37  ;;  %v1859_v50 = vld [vmem:[%s1999_s24 + $0x178] sm:$0xff] }
 0x101   : > { %1409 = vst.msk [vmem:[%s2331_s30 + $0x130] sm:$0xff] %vm467_vm0, %v1281_v55  ;;  %v1155_v61 = vmul.f32 %v1659_v60, %v2315_v37  ;;  %1668 = vtanh.f32 %v900_v56  ;;  %826 = vadd.xlane.f32.xlu1 %v825_v48  ;;  %823 = vadd.xlane.f32.xlu0 %v822_v49  ;;  %v2704_v48 = vld [vmem:[%s3112_s3] ss:$0 sm:$0xff]  ;;  %v1860_v60 = vld [vmem:[%s1999_s24 + $0x170] sm:$0xff] }
 0x102   : > { %v1284_v10 = vadd.f32 %v1852_v53, %v1156_v30  ;;  %1670 = vtanh.f32 %v899_v57  ;;  %v617_v54 = vpop.xlane.xlu1 %616  ;;  %v614_v63 = vpop.xlane.xlu0 %613  ;;  %v849_v57 = vsel %vm467_vm0, %v466_v40, 0.0 }
 0x103   : > { %v1661_v11 = vpop.eup %1660  ;;  %v1283_v13 = vadd.f32 %v1853_v12, %v1155_v61  ;;  %v902_v14 = vadd.f32 %v2286_v52, %v617_v54  ;;  %v901_v35 = vadd.f32 %v2286_v52, %v614_v63  ;;  %v1861_v54 = vld [vmem:[%s1999_s24 + $0x188] sm:$0xff] }
 0x104   : > { %v1663_v15 = vpop.eup %1662  ;;  %1412 = vst.msk [vmem:[%s2331_s30 + $0x148] sm:$0xff] %vm467_vm0, %v1284_v10  ;;  %v1158_v36 = vmul.f32 %v1661_v11, %v2315_v37 }
 0x105   : > { %1411 = vst.msk [vmem:[%s2331_s30 + $0x140] sm:$0xff] %vm467_vm0, %v1283_v13  ;;  %v1157_v16 = vmul.f32 %v1663_v15, %v2315_v37  ;;  %1672 = vtanh.f32 %v902_v14  ;;  %832 = vadd.xlane.f32.xlu1 %v831_v9  ;;  %829 = vadd.xlane.f32.xlu0 %v828_v62 }
 0x106   : > { %v1286_v17 = vadd.f32 %v1854_v19, %v1158_v36  ;;  %1674 = vtanh.f32 %v901_v35  ;;  %v623_v2 = vpop.xlane.xlu1 %622  ;;  %v620_v18 = vpop.xlane.xlu0 %619  ;;  %v1863_v36 = vld [vmem:[%s1999_s24 + $0x198] sm:$0xff] }
 0x107   : > { %v1665_v22 = vpop.eup %1664  ;;  %v1285_v26 = vadd.f32 %v1855_v25, %v1157_v16  ;;  %v904_v27 = vadd.f32 %v2286_v52, %v623_v2  ;;  %v903_v28 = vadd.f32 %v2286_v52, %v620_v18 }
 0x108   : > { %v1667_v42 = vpop.eup %1666  ;;  %1414 = vst.msk [vmem:[%s2331_s30 + $0x158] sm:$0xff] %vm467_vm0, %v1286_v17  ;;  %v1160_v32 = vmul.f32 %v1665_v22, %v2315_v37  ;;  %v1864_v17 = vld [vmem:[%s1999_s24 + $0x190] sm:$0xff] }
 0x109   : > { %1413 = vst.msk [vmem:[%s2331_s30 + $0x150] sm:$0xff] %vm467_vm0, %v1285_v26  ;;  %v1159_v33 = vmul.f32 %v1667_v42, %v2315_v37  ;;  %1676 = vtanh.f32 %v904_v27  ;;  %838 = vadd.xlane.f32.xlu1 %v837_v20  ;;  %835 = vadd.xlane.f32.xlu0 %v834_v21  ;;  %v1865_v26 = vld [vmem:[%s1999_s24 + $0x1a8] sm:$0xff]  ;;  %v1866_v42 = vld [vmem:[%s1999_s24 + $0x1a0] sm:$0xff] }
 0x10a   : > { %v1288_v23 = vadd.f32 %v1856_v39, %v1160_v32  ;;  %1678 = vtanh.f32 %v903_v28  ;;  %v629_v3 = vpop.xlane.xlu1 %628  ;;  %v626_v24 = vpop.xlane.xlu0 %625 }
 0x10b   : > { %v1669_v37 = vpop.eup %1668  ;;  %v1287_v44 = vadd.f32 %v1857_v43, %v1159_v33  ;;  %v906_v45 = vadd.f32 %v2286_v52, %v629_v3  ;;  %v905_v47 = vadd.f32 %v2286_v52, %v626_v24  ;;  %v1867_v3 = vld [vmem:[%s1999_s24 + $0x1b8] sm:$0xff]  ;;  %v1868_v43 = vld [vmem:[%s1999_s24 + $0x1b0] sm:$0xff] }
 0x10c   : > { %v1671_v46 = vpop.eup %1670  ;;  %1416 = vst.msk [vmem:[%s2331_s30 + $0x168] sm:$0xff] %vm467_vm0, %v1288_v23  ;;  %v1162_v49 = vmul.f32 %v2704_v48, %v1669_v37 }
 0x10d   : > { %1415 = vst.msk [vmem:[%s2331_s30 + $0x160] sm:$0xff] %vm467_vm0, %v1287_v44  ;;  %v1161_v0 = vmul.f32 %v2704_v48, %v1671_v46  ;;  %1680 = vtanh.f32 %v906_v45  ;;  %844 = vadd.xlane.f32.xlu1 %v843_v34  ;;  %841 = vadd.xlane.f32.xlu0 %v840_v38 }
 0x10e   : > { %v1290_v51 = vadd.f32 %v1859_v50, %v1162_v49  ;;  %1682 = vtanh.f32 %v905_v47  ;;  %v635_v55 = vpop.xlane.xlu1 %634  ;;  %v632_v56 = vpop.xlane.xlu0 %631  ;;  %v1869_v50 = vld [vmem:[%s1999_s24 + $0x1c8] sm:$0xff] }
 0x10f   : > { %v1673_v29 = vpop.eup %1672  ;;  %v1289_v30 = vadd.f32 %v1860_v60, %v1161_v0  ;;  %v908_v61 = vadd.f32 %v2286_v52, %v635_v55  ;;  %v907_v9 = vadd.f32 %v2286_v52, %v632_v56 }
 0x110   : > { %v1675_v62 = vpop.eup %1674  ;;  %1418 = vst.msk [vmem:[%s2331_s30 + $0x178] sm:$0xff] %vm467_vm0, %v1290_v51  ;;  %v1164_v53 = vmul.f32 %v2704_v48, %v1673_v29 }
 0x111   : > { %1417 = vst.msk [vmem:[%s2331_s30 + $0x170] sm:$0xff] %vm467_vm0, %v1289_v30  ;;  %v1163_v10 = vmul.f32 %v2704_v48, %v1675_v62  ;;  %1684 = vtanh.f32 %v908_v61  ;;  %850 = vadd.xlane.f32.xlu1 %v849_v57  ;;  %847 = vadd.xlane.f32.xlu0 %v846_v58  ;;  %v1870_v58 = vld [vmem:[%s1999_s24 + $0x1c0] sm:$0xff] }
 0x112   : > { %v1292_v63 = vadd.f32 %v1861_v54, %v1164_v53  ;;  %1686 = vtanh.f32 %v907_v9  ;;  %v641_v4 = vpop.xlane.xlu1 %640  ;;  %v638_v5 = vpop.xlane.xlu0 %637  ;;  %v1871_v53 = vld [vmem:[%s1999_s24 + $0x1d8] sm:$0xff] }
 0x113   : > { %v1677_v6 = vpop.eup %1676  ;;  %v1291_v11 = vadd.f32 %v1862_v8, %v1163_v10  ;;  %v910_v12 = vadd.f32 %v2286_v52, %v641_v4  ;;  %v909_v13 = vadd.f32 %v2286_v52, %v638_v5  ;;  %v1872_v5 = vld [vmem:[%s1999_s24 + $0x1d0] sm:$0xff] }
 0x114   : > { %v1679_v14 = vpop.eup %1678  ;;  %1420 = vst.msk [vmem:[%s2331_s30 + $0x188] sm:$0xff] %vm467_vm0, %v1292_v63  ;;  %v1166_v35 = vmul.f32 %v2704_v48, %v1677_v6 }
 0x115   : > { %1419 = vst.msk [vmem:[%s2331_s30 + $0x180] sm:$0xff] %vm467_vm0, %v1291_v11  ;;  %v1165_v15 = vmul.f32 %v2704_v48, %v1679_v14  ;;  %1688 = vtanh.f32 %v910_v12 }
 0x116   : > { %v1294_v16 = vadd.f32 %v1863_v36, %v1166_v35  ;;  %1690 = vtanh.f32 %v909_v13  ;;  %v647_v1 = vpop.xlane.xlu1 %646  ;;  %v644_v59 = vpop.xlane.xlu0 %643  ;;  %v1873_v35 = vld [vmem:[%s1999_s24 + $0x1e8] sm:$0xff] }
 0x117   : > { %v1681_v19 = vpop.eup %1680  ;;  %v1293_v2 = vadd.f32 %v1864_v17, %v1165_v15  ;;  %v912_v18 = vadd.f32 %v2286_v52, %v647_v1  ;;  %v911_v20 = vadd.f32 %v2286_v52, %v644_v59  ;;  %v1874_v59 = vld [vmem:[%s1999_s24 + $0x1e0] sm:$0xff] }
 0x118   : > { %v1683_v21 = vpop.eup %1682  ;;  %1422 = vst.msk [vmem:[%s2331_s30 + $0x198] sm:$0xff] %vm467_vm0, %v1294_v16  ;;  %v1168_v22 = vmul.f32 %v2704_v48, %v1681_v19 }
 0x119   : > { %1421 = vst.msk [vmem:[%s2331_s30 + $0x190] sm:$0xff] %vm467_vm0, %v1293_v2  ;;  %v1167_v25 = vmul.f32 %v2704_v48, %v1683_v21  ;;  %1692 = vtanh.f32 %v912_v18 }
 0x11a   : > { %v1296_v27 = vadd.f32 %v1865_v26, %v1168_v22  ;;  %1694 = vtanh.f32 %v911_v20  ;;  %v653_v28 = vpop.xlane.xlu1 %652  ;;  %v650_v41 = vpop.xlane.xlu0 %649  ;;  %v1875_v22 = vld [vmem:[%s1999_s24 + $0x1f8] sm:$0xff] }
 0x11b   : > { %v1685_v31 = vpop.eup %1684  ;;  %v1295_v32 = vadd.f32 %v1866_v42, %v1167_v25  ;;  %v914_v33 = vadd.f32 %v2286_v52, %v653_v28  ;;  %v913_v34 = vadd.f32 %v2286_v52, %v650_v41  ;;  %v1876_v41 = vld [vmem:[%s1999_s24 + $0x1f0] sm:$0xff] }
 0x11c   : > { %v1687_v38 = vpop.eup %1686  ;;  %1424 = vst.msk [vmem:[%s2331_s30 + $0x1a8] sm:$0xff] %vm467_vm0, %v1296_v27  ;;  %v1170_v39 = vmul.f32 %v2704_v48, %v1685_v31 }
 0x11d   : > { %1423 = vst.msk [vmem:[%s2331_s30 + $0x1a0] sm:$0xff] %vm467_vm0, %v1295_v32  ;;  %v1169_v23 = vmul.f32 %v2704_v48, %v1687_v38  ;;  %1696 = vtanh.f32 %v914_v33 }
 0x11e   : > { %v1298_v24 = vadd.f32 %v1867_v3, %v1170_v39  ;;  %1698 = vtanh.f32 %v913_v34  ;;  %v659_v40 = vpop.xlane.xlu1 %658  ;;  %v656_v7 = vpop.xlane.xlu0 %655  ;;  %v1877_v39 = vld [vmem:[%s1999_s24 + $0x208] sm:$0xff] }
 0x11f   : > { %v1689_v37 = vpop.eup %1688  ;;  %v1297_v44 = vadd.f32 %v1868_v43, %v1169_v23  ;;  %v916_v45 = vadd.f32 %v2286_v52, %v659_v40  ;;  %v915_v47 = vadd.f32 %v2286_v52, %v656_v7  ;;  %v1878_v7 = vld [vmem:[%s1999_s24 + $0x200] sm:$0xff] }
 0x120   : > { %v1691_v46 = vpop.eup %1690  ;;  %1426 = vst.msk [vmem:[%s2331_s30 + $0x1b8] sm:$0xff] %vm467_vm0, %v1298_v24  ;;  %v1172_v49 = vmul.f32 %v2704_v48, %v1689_v37 }
 0x121   : > { %1425 = vst.msk [vmem:[%s2331_s30 + $0x1b0] sm:$0xff] %vm467_vm0, %v1297_v44  ;;  %v1171_v0 = vmul.f32 %v2704_v48, %v1691_v46  ;;  %1700 = vtanh.f32 %v916_v45 }
 0x122   : > { %v1300_v51 = vadd.f32 %v1869_v50, %v1172_v49  ;;  %1702 = vtanh.f32 %v915_v47  ;;  %v665_v55 = vpop.xlane.xlu1 %664  ;;  %v662_v56 = vpop.xlane.xlu0 %661  ;;  %v1879_v49 = vld [vmem:[%s1999_s24 + $0x218] sm:$0xff] }
 0x123   : > { %v1693_v57 = vpop.eup %1692  ;;  %v1299_v29 = vadd.f32 %v1870_v58, %v1171_v0  ;;  %v918_v60 = vadd.f32 %v2286_v52, %v665_v55  ;;  %v917_v30 = vadd.f32 %v2286_v52, %v662_v56  ;;  %v1880_v56 = vld [vmem:[%s1999_s24 + $0x210] sm:$0xff] }
 0x124   : > { %v1695_v61 = vpop.eup %1694  ;;  %1428 = vst.msk [vmem:[%s2331_s30 + $0x1c8] sm:$0xff] %vm467_vm0, %v1300_v51  ;;  %v1174_v9 = vmul.f32 %v2704_v48, %v1693_v57 }
 0x125   : > { %1427 = vst.msk [vmem:[%s2331_s30 + $0x1c0] sm:$0xff] %vm467_vm0, %v1299_v29  ;;  %v1173_v62 = vmul.f32 %v2704_v48, %v1695_v61  ;;  %1704 = vtanh.f32 %v918_v60 }
 0x126   : > { %v1302_v10 = vadd.f32 %v1871_v53, %v1174_v9  ;;  %1706 = vtanh.f32 %v917_v30  ;;  %v671_v54 = vpop.xlane.xlu1 %670  ;;  %v668_v63 = vpop.xlane.xlu0 %667  ;;  %v1881_v9 = vld [vmem:[%s1999_s24 + $0x228] sm:$0xff] }
 0x127   : > { %v1697_v4 = vpop.eup %1696  ;;  %v1301_v6 = vadd.f32 %v1872_v5, %v1173_v62  ;;  %v920_v8 = vadd.f32 %v2286_v52, %v671_v54  ;;  %v919_v11 = vadd.f32 %v2286_v52, %v668_v63  ;;  %v1882_v63 = vld [vmem:[%s1999_s24 + $0x220] sm:$0xff] }
 0x128   : > { %v1699_v12 = vpop.eup %1698  ;;  %1430 = vst.msk [vmem:[%s2331_s30 + $0x1d8] sm:$0xff] %vm467_vm0, %v1302_v10  ;;  %v1176_v13 = vmul.f32 %v2704_v48, %v1697_v4 }
 0x129   : > { %1429 = vst.msk [vmem:[%s2331_s30 + $0x1d0] sm:$0xff] %vm467_vm0, %v1301_v6  ;;  %v1175_v14 = vmul.f32 %v2704_v48, %v1699_v12  ;;  %1708 = vtanh.f32 %v920_v8 }
 0x12a   : > { %v1304_v15 = vadd.f32 %v1873_v35, %v1176_v13  ;;  %1710 = vtanh.f32 %v919_v11  ;;  %v677_v36 = vpop.xlane.xlu1 %676  ;;  %v674_v16 = vpop.xlane.xlu0 %673  ;;  %v1883_v13 = vld [vmem:[%s1999_s24 + $0x238] sm:$0xff] }
 0x12b   : > { %v1701_v1 = vpop.eup %1700  ;;  %v1303_v19 = vadd.f32 %v1874_v59, %v1175_v14  ;;  %v922_v17 = vadd.f32 %v2286_v52, %v677_v36  ;;  %v921_v2 = vadd.f32 %v2286_v52, %v674_v16  ;;  %v1884_v16 = vld [vmem:[%s1999_s24 + $0x230] sm:$0xff] }
 0x12c   : > { %v1703_v18 = vpop.eup %1702  ;;  %1432 = vst.msk [vmem:[%s2331_s30 + $0x1e8] sm:$0xff] %vm467_vm0, %v1304_v15  ;;  %v1178_v20 = vmul.f32 %v2704_v48, %v1701_v1 }
 0x12d   : > { %1431 = vst.msk [vmem:[%s2331_s30 + $0x1e0] sm:$0xff] %vm467_vm0, %v1303_v19  ;;  %v1177_v21 = vmul.f32 %v2704_v48, %v1703_v18  ;;  %1712 = vtanh.f32 %v922_v17 }
 0x12e   : > { %v1306_v25 = vadd.f32 %v1875_v22, %v1178_v20  ;;  %1714 = vtanh.f32 %v921_v2  ;;  %v683_v26 = vpop.xlane.xlu1 %682  ;;  %v680_v27 = vpop.xlane.xlu0 %679  ;;  %v1885_v20 = vld [vmem:[%s1999_s24 + $0x248] sm:$0xff] }
 0x12f   : > { %v1705_v28 = vpop.eup %1704  ;;  %v1305_v31 = vadd.f32 %v1876_v41, %v1177_v21  ;;  %v924_v42 = vadd.f32 %v2286_v52, %v683_v26  ;;  %v923_v32 = vadd.f32 %v2286_v52, %v680_v27  ;;  %v1886_v27 = vld [vmem:[%s1999_s24 + $0x240] sm:$0xff] }
 0x130   : > { %v1707_v33 = vpop.eup %1706  ;;  %1434 = vst.msk [vmem:[%s2331_s30 + $0x1f8] sm:$0xff] %vm467_vm0, %v1306_v25  ;;  %v1180_v34 = vmul.f32 %v2704_v48, %v1705_v28 }
 0x131   : > { %1433 = vst.msk [vmem:[%s2331_s30 + $0x1f0] sm:$0xff] %vm467_vm0, %v1305_v31  ;;  %v1179_v38 = vmul.f32 %v2704_v48, %v1707_v33  ;;  %1716 = vtanh.f32 %v924_v42 }
 0x132   : > { %v1308_v23 = vadd.f32 %v1877_v39, %v1180_v34  ;;  %1718 = vtanh.f32 %v923_v32  ;;  %v689_v3 = vpop.xlane.xlu1 %688  ;;  %v686_v24 = vpop.xlane.xlu0 %685  ;;  %v1887_v34 = vld [vmem:[%s1999_s24 + $0x258] sm:$0xff] }
 0x133   : > { %v1709_v40 = vpop.eup %1708  ;;  %v1307_v37 = vadd.f32 %v1878_v7, %v1179_v38  ;;  %v926_v43 = vadd.f32 %v2286_v52, %v689_v3  ;;  %v925_v44 = vadd.f32 %v2286_v52, %v686_v24  ;;  %v1888_v24 = vld [vmem:[%s1999_s24 + $0x250] sm:$0xff] }
 0x134   : > { %v1711_v45 = vpop.eup %1710  ;;  %1436 = vst.msk [vmem:[%s2331_s30 + $0x208] sm:$0xff] %vm467_vm0, %v1308_v23  ;;  %v1182_v47 = vmul.f32 %v2704_v48, %v1709_v40 }
 0x135   : > { %1435 = vst.msk [vmem:[%s2331_s30 + $0x200] sm:$0xff] %vm467_vm0, %v1307_v37  ;;  %v1181_v46 = vmul.f32 %v2704_v48, %v1711_v45  ;;  %1720 = vtanh.f32 %v926_v43 }
 0x136   : > { %v1310_v0 = vadd.f32 %v1879_v49, %v1182_v47  ;;  %1722 = vtanh.f32 %v925_v44  ;;  %v695_v50 = vpop.xlane.xlu1 %694  ;;  %v692_v51 = vpop.xlane.xlu0 %691  ;;  %v1889_v47 = vld [vmem:[%s1999_s24 + $0x268] sm:$0xff] }
 0x137   : > { %v1713_v55 = vpop.eup %1712  ;;  %v1309_v57 = vadd.f32 %v1880_v56, %v1181_v46  ;;  %v928_v58 = vadd.f32 %v2286_v52, %v695_v50  ;;  %v927_v29 = vadd.f32 %v2286_v52, %v692_v51  ;;  %v1890_v51 = vld [vmem:[%s1999_s24 + $0x260] sm:$0xff] }
 0x138   : > { %v1715_v60 = vpop.eup %1714  ;;  %1438 = vst.msk [vmem:[%s2331_s30 + $0x218] sm:$0xff] %vm467_vm0, %v1310_v0  ;;  %v1184_v30 = vmul.f32 %v2704_v48, %v1713_v55 }
 0x139   : > { %1437 = vst.msk [vmem:[%s2331_s30 + $0x210] sm:$0xff] %vm467_vm0, %v1309_v57  ;;  %v1183_v61 = vmul.f32 %v2704_v48, %v1715_v60  ;;  %1724 = vtanh.f32 %v928_v58 }
 0x13a   : > { %v1312_v62 = vadd.f32 %v1881_v9, %v1184_v30  ;;  %1726 = vtanh.f32 %v927_v29  ;;  %v701_v53 = vpop.xlane.xlu1 %700  ;;  %v698_v10 = vpop.xlane.xlu0 %697  ;;  %v1891_v30 = vld [vmem:[%s1999_s24 + $0x278] sm:$0xff] }
 0x13b   : > { %v1717_v54 = vpop.eup %1716  ;;  %v1311_v4 = vadd.f32 %v1882_v63, %v1183_v61  ;;  %v930_v5 = vadd.f32 %v2286_v52, %v701_v53  ;;  %v929_v6 = vadd.f32 %v2286_v52, %v698_v10  ;;  %v1892_v10 = vld [vmem:[%s1999_s24 + $0x270] sm:$0xff] }
 0x13c   : > { %v1719_v8 = vpop.eup %1718  ;;  %1440 = vst.msk [vmem:[%s2331_s30 + $0x228] sm:$0xff] %vm467_vm0, %v1312_v62  ;;  %v1186_v11 = vmul.f32 %v2704_v48, %v1717_v54 }
 0x13d   : > { %1439 = vst.msk [vmem:[%s2331_s30 + $0x220] sm:$0xff] %vm467_vm0, %v1311_v4  ;;  %v1185_v12 = vmul.f32 %v2704_v48, %v1719_v8  ;;  %1728 = vtanh.f32 %v930_v5 }
 0x13e   : > { %v1314_v14 = vadd.f32 %v1883_v13, %v1186_v11  ;;  %1730 = vtanh.f32 %v929_v6  ;;  %v707_v35 = vpop.xlane.xlu1 %706  ;;  %v704_v15 = vpop.xlane.xlu0 %703  ;;  %v1893_v11 = vld [vmem:[%s1999_s24 + $0x288] sm:$0xff] }
 0x13f   : > { %v1721_v36 = vpop.eup %1720  ;;  %v1313_v1 = vadd.f32 %v1884_v16, %v1185_v12  ;;  %v932_v59 = vadd.f32 %v2286_v52, %v707_v35  ;;  %v931_v19 = vadd.f32 %v2286_v52, %v704_v15  ;;  %v1894_v15 = vld [vmem:[%s1999_s24 + $0x280] sm:$0xff] }
 0x140   : > { %v1723_v17 = vpop.eup %1722  ;;  %1442 = vst.msk [vmem:[%s2331_s30 + $0x238] sm:$0xff] %vm467_vm0, %v1314_v14  ;;  %v1188_v2 = vmul.f32 %v2704_v48, %v1721_v36 }
 0x141   : > { %1441 = vst.msk [vmem:[%s2331_s30 + $0x230] sm:$0xff] %vm467_vm0, %v1313_v1  ;;  %v1187_v18 = vmul.f32 %v2704_v48, %v1723_v17  ;;  %1732 = vtanh.f32 %v932_v59 }
 0x142   : > { %v1316_v21 = vadd.f32 %v1885_v20, %v1188_v2  ;;  %1734 = vtanh.f32 %v931_v19  ;;  %v713_v22 = vpop.xlane.xlu1 %712  ;;  %v710_v25 = vpop.xlane.xlu0 %709  ;;  %v1895_v2 = vld [vmem:[%s1999_s24 + $0x298] sm:$0xff] }
 0x143   : > { %v1725_v26 = vpop.eup %1724  ;;  %v1315_v28 = vadd.f32 %v1886_v27, %v1187_v18  ;;  %v934_v41 = vadd.f32 %v2286_v52, %v713_v22  ;;  %v933_v31 = vadd.f32 %v2286_v52, %v710_v25  ;;  %v1896_v25 = vld [vmem:[%s1999_s24 + $0x290] sm:$0xff] }
 0x144   : > { %v1727_v42 = vpop.eup %1726  ;;  %1444 = vst.msk [vmem:[%s2331_s30 + $0x248] sm:$0xff] %vm467_vm0, %v1316_v21  ;;  %v1190_v32 = vmul.f32 %v2704_v48, %v1725_v26 }
 0x145   : > { %1443 = vst.msk [vmem:[%s2331_s30 + $0x240] sm:$0xff] %vm467_vm0, %v1315_v28  ;;  %v1189_v33 = vmul.f32 %v2704_v48, %v1727_v42  ;;  %1736 = vtanh.f32 %v934_v41 }
 0x146   : > { %v1318_v38 = vadd.f32 %v1887_v34, %v1190_v32  ;;  %1738 = vtanh.f32 %v933_v31  ;;  %v719_v39 = vpop.xlane.xlu1 %718  ;;  %v716_v23 = vpop.xlane.xlu0 %715  ;;  %v1897_v32 = vld [vmem:[%s1999_s24 + $0x2a8] sm:$0xff] }
 0x147   : > { %v1729_v3 = vpop.eup %1728  ;;  %v1317_v40 = vadd.f32 %v1888_v24, %v1189_v33  ;;  %v936_v7 = vadd.f32 %v2286_v52, %v719_v39  ;;  %v935_v37 = vadd.f32 %v2286_v52, %v716_v23  ;;  %v1898_v23 = vld [vmem:[%s1999_s24 + $0x2a0] sm:$0xff] }
 0x148   : > { %v1731_v43 = vpop.eup %1730  ;;  %1446 = vst.msk [vmem:[%s2331_s30 + $0x258] sm:$0xff] %vm467_vm0, %v1318_v38  ;;  %v1192_v44 = vmul.f32 %v2704_v48, %v1729_v3 }
 0x149   : > { %1445 = vst.msk [vmem:[%s2331_s30 + $0x250] sm:$0xff] %vm467_vm0, %v1317_v40  ;;  %v1191_v45 = vmul.f32 %v2704_v48, %v1731_v43  ;;  %1740 = vtanh.f32 %v936_v7 }
 0x14a   : > { %v1320_v46 = vadd.f32 %v1889_v47, %v1192_v44  ;;  %1742 = vtanh.f32 %v935_v37  ;;  %v725_v49 = vpop.xlane.xlu1 %724  ;;  %v722_v0 = vpop.xlane.xlu0 %721  ;;  %v1899_v44 = vld [vmem:[%s1999_s24 + $0x2b8] sm:$0xff] }
 0x14b   : > { %v1733_v50 = vpop.eup %1732  ;;  %v1319_v55 = vadd.f32 %v1890_v51, %v1191_v45  ;;  %v938_v56 = vadd.f32 %v2286_v52, %v725_v49  ;;  %v937_v57 = vadd.f32 %v2286_v52, %v722_v0  ;;  %v1900_v0 = vld [vmem:[%s1999_s24 + $0x2b0] sm:$0xff] }
 0x14c   : > { %v1735_v58 = vpop.eup %1734  ;;  %1448 = vst.msk [vmem:[%s2331_s30 + $0x268] sm:$0xff] %vm467_vm0, %v1320_v46  ;;  %v1194_v29 = vmul.f32 %v2704_v48, %v1733_v50 }
 0x14d   : > { %1447 = vst.msk [vmem:[%s2331_s30 + $0x260] sm:$0xff] %vm467_vm0, %v1319_v55  ;;  %v1193_v60 = vmul.f32 %v2704_v48, %v1735_v58  ;;  %1744 = vtanh.f32 %v938_v56 }
 0x14e   : > { %v1322_v61 = vadd.f32 %v1891_v30, %v1194_v29  ;;  %1746 = vtanh.f32 %v937_v57  ;;  %v731_v9 = vpop.xlane.xlu1 %730  ;;  %v728_v62 = vpop.xlane.xlu0 %727  ;;  %v1901_v29 = vld [vmem:[%s1999_s24 + $0x2c8] sm:$0xff] }
 0x14f   : > { %v1737_v53 = vpop.eup %1736  ;;  %v1321_v54 = vadd.f32 %v1892_v10, %v1193_v60  ;;  %v940_v63 = vadd.f32 %v2286_v52, %v731_v9  ;;  %v939_v4 = vadd.f32 %v2286_v52, %v728_v62  ;;  %v1902_v62 = vld [vmem:[%s1999_s24 + $0x2c0] sm:$0xff] }
 0x150   : > { %v1739_v5 = vpop.eup %1738  ;;  %1450 = vst.msk [vmem:[%s2331_s30 + $0x278] sm:$0xff] %vm467_vm0, %v1322_v61  ;;  %v1196_v6 = vmul.f32 %v2704_v48, %v1737_v53 }
 0x151   : > { %1449 = vst.msk [vmem:[%s2331_s30 + $0x270] sm:$0xff] %vm467_vm0, %v1321_v54  ;;  %v1195_v8 = vmul.f32 %v2704_v48, %v1739_v5  ;;  %1748 = vtanh.f32 %v940_v63 }
 0x152   : > { %v1324_v12 = vadd.f32 %v1893_v11, %v1196_v6  ;;  %1750 = vtanh.f32 %v939_v4  ;;  %v737_v13 = vpop.xlane.xlu1 %736  ;;  %v734_v14 = vpop.xlane.xlu0 %733  ;;  %v1903_v6 = vld [vmem:[%s1999_s24 + $0x2d8] sm:$0xff] }
 0x153   : > { %v1741_v35 = vpop.eup %1740  ;;  %v1323_v36 = vadd.f32 %v1894_v15, %v1195_v8  ;;  %v942_v16 = vadd.f32 %v2286_v52, %v737_v13  ;;  %v941_v1 = vadd.f32 %v2286_v52, %v734_v14  ;;  %v1904_v14 = vld [vmem:[%s1999_s24 + $0x2d0] sm:$0xff] }
 0x154   : > { %v1743_v59 = vpop.eup %1742  ;;  %1452 = vst.msk [vmem:[%s2331_s30 + $0x288] sm:$0xff] %vm467_vm0, %v1324_v12  ;;  %v1198_v19 = vmul.f32 %v2704_v48, %v1741_v35 }
 0x155   : > { %1451 = vst.msk [vmem:[%s2331_s30 + $0x280] sm:$0xff] %vm467_vm0, %v1323_v36  ;;  %v1197_v17 = vmul.f32 %v2704_v48, %v1743_v59  ;;  %1752 = vtanh.f32 %v942_v16 }
 0x156   : > { %v1326_v18 = vadd.f32 %v1895_v2, %v1198_v19  ;;  %1754 = vtanh.f32 %v941_v1  ;;  %v743_v20 = vpop.xlane.xlu1 %742  ;;  %v740_v21 = vpop.xlane.xlu0 %739  ;;  %v1905_v19 = vld [vmem:[%s1999_s24 + $0x2e8] sm:$0xff] }
 0x157   : > { %v1745_v22 = vpop.eup %1744  ;;  %v1325_v26 = vadd.f32 %v1896_v25, %v1197_v17  ;;  %v944_v27 = vadd.f32 %v2286_v52, %v743_v20  ;;  %v943_v28 = vadd.f32 %v2286_v52, %v740_v21  ;;  %v1906_v21 = vld [vmem:[%s1999_s24 + $0x2e0] sm:$0xff] }
 0x158   : > { %v1747_v41 = vpop.eup %1746  ;;  %1454 = vst.msk [vmem:[%s2331_s30 + $0x298] sm:$0xff] %vm467_vm0, %v1326_v18  ;;  %v1200_v31 = vmul.f32 %v2704_v48, %v1745_v22 }
 0x159   : > { %1453 = vst.msk [vmem:[%s2331_s30 + $0x290] sm:$0xff] %vm467_vm0, %v1325_v26  ;;  %v1199_v42 = vmul.f32 %v2704_v48, %v1747_v41  ;;  %1756 = vtanh.f32 %v944_v27 }
 0x15a   : > { %v1328_v33 = vadd.f32 %v1897_v32, %v1200_v31  ;;  %1758 = vtanh.f32 %v943_v28  ;;  %v749_v34 = vpop.xlane.xlu1 %748  ;;  %v746_v38 = vpop.xlane.xlu0 %745  ;;  %v1907_v31 = vld [vmem:[%s1999_s24 + $0x2f8] sm:$0xff] }
 0x15b   : > { %v1749_v39 = vpop.eup %1748  ;;  %v1327_v3 = vadd.f32 %v1898_v23, %v1199_v42  ;;  %v946_v24 = vadd.f32 %v2286_v52, %v749_v34  ;;  %v945_v40 = vadd.f32 %v2286_v52, %v746_v38  ;;  %v1908_v38 = vld [vmem:[%s1999_s24 + $0x2f0] sm:$0xff] }
 0x15c   : > { %v1751_v7 = vpop.eup %1750  ;;  %1456 = vst.msk [vmem:[%s2331_s30 + $0x2a8] sm:$0xff] %vm467_vm0, %v1328_v33  ;;  %v1202_v37 = vmul.f32 %v2704_v48, %v1749_v39 }
 0x15d   : > { %1455 = vst.msk [vmem:[%s2331_s30 + $0x2a0] sm:$0xff] %vm467_vm0, %v1327_v3  ;;  %v1201_v43 = vmul.f32 %v2704_v48, %v1751_v7  ;;  %1760 = vtanh.f32 %v946_v24 }
 0x15e   : > { %v1330_v45 = vadd.f32 %v1899_v44, %v1202_v37  ;;  %1762 = vtanh.f32 %v945_v40  ;;  %v755_v47 = vpop.xlane.xlu1 %754  ;;  %v752_v46 = vpop.xlane.xlu0 %751  ;;  %v1909_v37 = vld [vmem:[%s1999_s24 + $0x308] sm:$0xff] }
 0x15f   : > { %v1753_v49 = vpop.eup %1752  ;;  %v1329_v50 = vadd.f32 %v1900_v0, %v1201_v43  ;;  %v948_v51 = vadd.f32 %v2286_v52, %v755_v47  ;;  %v947_v55 = vadd.f32 %v2286_v52, %v752_v46  ;;  %v1910_v46 = vld [vmem:[%s1999_s24 + $0x300] sm:$0xff] }
 0x160   : > { %v1755_v56 = vpop.eup %1754  ;;  %1458 = vst.msk [vmem:[%s2331_s30 + $0x2b8] sm:$0xff] %vm467_vm0, %v1330_v45  ;;  %v1204_v57 = vmul.f32 %v2704_v48, %v1753_v49 }
 0x161   : > { %1457 = vst.msk [vmem:[%s2331_s30 + $0x2b0] sm:$0xff] %vm467_vm0, %v1329_v50  ;;  %v1203_v58 = vmul.f32 %v2704_v48, %v1755_v56  ;;  %1764 = vtanh.f32 %v948_v51 }
 0x162   : > { %v1332_v60 = vadd.f32 %v1901_v29, %v1204_v57  ;;  %1766 = vtanh.f32 %v947_v55  ;;  %v761_v30 = vpop.xlane.xlu1 %760  ;;  %v758_v61 = vpop.xlane.xlu0 %757  ;;  %v1911_v57 = vld [vmem:[%s1999_s24 + $0x318] sm:$0xff] }
 0x163   : > { %v1757_v9 = vpop.eup %1756  ;;  %v1331_v53 = vadd.f32 %v1902_v62, %v1203_v58  ;;  %v950_v10 = vadd.f32 %v2286_v52, %v761_v30  ;;  %v949_v54 = vadd.f32 %v2286_v52, %v758_v61  ;;  %v1912_v61 = vld [vmem:[%s1999_s24 + $0x310] sm:$0xff] }
 0x164   : > { %v1759_v63 = vpop.eup %1758  ;;  %1460 = vst.msk [vmem:[%s2331_s30 + $0x2c8] sm:$0xff] %vm467_vm0, %v1332_v60  ;;  %v1206_v4 = vmul.f32 %v2704_v48, %v1757_v9 }
 0x165   : > { %1459 = vst.msk [vmem:[%s2331_s30 + $0x2c0] sm:$0xff] %vm467_vm0, %v1331_v53  ;;  %v1205_v5 = vmul.f32 %v2704_v48, %v1759_v63  ;;  %1768 = vtanh.f32 %v950_v10 }
 0x166   : > { %v1334_v8 = vadd.f32 %v1903_v6, %v1206_v4  ;;  %1770 = vtanh.f32 %v949_v54  ;;  %v767_v11 = vpop.xlane.xlu1 %766  ;;  %v764_v12 = vpop.xlane.xlu0 %763  ;;  %v1913_v4 = vld [vmem:[%s1999_s24 + $0x328] sm:$0xff] }
 0x167   : > { %v1761_v13 = vpop.eup %1760  ;;  %v1333_v35 = vadd.f32 %v1904_v14, %v1205_v5  ;;  %v952_v15 = vadd.f32 %v2286_v52, %v767_v11  ;;  %v951_v36 = vadd.f32 %v2286_v52, %v764_v12  ;;  %v1914_v12 = vld [vmem:[%s1999_s24 + $0x320] sm:$0xff] }
 0x168   : > { %v1763_v16 = vpop.eup %1762  ;;  %1462 = vst.msk [vmem:[%s2331_s30 + $0x2d8] sm:$0xff] %vm467_vm0, %v1334_v8  ;;  %v1208_v1 = vmul.f32 %v2704_v48, %v1761_v13 }
 0x169   : > { %1461 = vst.msk [vmem:[%s2331_s30 + $0x2d0] sm:$0xff] %vm467_vm0, %v1333_v35  ;;  %v1207_v59 = vmul.f32 %v2704_v48, %v1763_v16  ;;  %1772 = vtanh.f32 %v952_v15 }
 0x16a   : > { %v1336_v17 = vadd.f32 %v1905_v19, %v1208_v1  ;;  %1774 = vtanh.f32 %v951_v36  ;;  %v773_v2 = vpop.xlane.xlu1 %772  ;;  %v770_v18 = vpop.xlane.xlu0 %769  ;;  %v1915_v1 = vld [vmem:[%s1999_s24 + $0x338] sm:$0xff] }
 0x16b   : > { %v1765_v20 = vpop.eup %1764  ;;  %v1335_v22 = vadd.f32 %v1906_v21, %v1207_v59  ;;  %v954_v25 = vadd.f32 %v2286_v52, %v773_v2  ;;  %v953_v26 = vadd.f32 %v2286_v52, %v770_v18  ;;  %v1916_v18 = vld [vmem:[%s1999_s24 + $0x330] sm:$0xff] }
 0x16c   : > { %v1767_v27 = vpop.eup %1766  ;;  %1464 = vst.msk [vmem:[%s2331_s30 + $0x2e8] sm:$0xff] %vm467_vm0, %v1336_v17  ;;  %v1210_v28 = vmul.f32 %v2704_v48, %v1765_v20 }
 0x16d   : > { %1463 = vst.msk [vmem:[%s2331_s30 + $0x2e0] sm:$0xff] %vm467_vm0, %v1335_v22  ;;  %v1209_v41 = vmul.f32 %v2704_v48, %v1767_v27  ;;  %1776 = vtanh.f32 %v954_v25 }
 0x16e   : > { %v1338_v42 = vadd.f32 %v1907_v31, %v1210_v28  ;;  %1778 = vtanh.f32 %v953_v26  ;;  %v779_v32 = vpop.xlane.xlu1 %778  ;;  %v776_v33 = vpop.xlane.xlu0 %775  ;;  %v1917_v28 = vld [vmem:[%s1999_s24 + $0x348] sm:$0xff] }
 0x16f   : > { %v1769_v34 = vpop.eup %1768  ;;  %v1337_v39 = vadd.f32 %v1908_v38, %v1209_v41  ;;  %v956_v23 = vadd.f32 %v2286_v52, %v779_v32  ;;  %v955_v3 = vadd.f32 %v2286_v52, %v776_v33  ;;  %v1918_v33 = vld [vmem:[%s1999_s24 + $0x340] sm:$0xff] }
 0x170   : > { %v1771_v24 = vpop.eup %1770  ;;  %1466 = vst.msk [vmem:[%s2331_s30 + $0x2f8] sm:$0xff] %vm467_vm0, %v1338_v42  ;;  %v1212_v40 = vmul.f32 %v2704_v48, %v1769_v34 }
 0x171   : > { %1465 = vst.msk [vmem:[%s2331_s30 + $0x2f0] sm:$0xff] %vm467_vm0, %v1337_v39  ;;  %v1211_v7 = vmul.f32 %v2704_v48, %v1771_v24  ;;  %1780 = vtanh.f32 %v956_v23 }
 0x172   : > { %v1340_v43 = vadd.f32 %v1909_v37, %v1212_v40  ;;  %1782 = vtanh.f32 %v955_v3  ;;  %v785_v44 = vpop.xlane.xlu1 %784  ;;  %v782_v45 = vpop.xlane.xlu0 %781  ;;  %v1919_v40 = vld [vmem:[%s1999_s24 + $0x358] sm:$0xff] }
 0x173   : > { %v1773_v47 = vpop.eup %1772  ;;  %v1339_v49 = vadd.f32 %v1910_v46, %v1211_v7  ;;  %v958_v0 = vadd.f32 %v2286_v52, %v785_v44  ;;  %v957_v50 = vadd.f32 %v2286_v52, %v782_v45  ;;  %v1920_v45 = vld [vmem:[%s1999_s24 + $0x350] sm:$0xff] }
 0x174   : > { %v1775_v51 = vpop.eup %1774  ;;  %1468 = vst.msk [vmem:[%s2331_s30 + $0x308] sm:$0xff] %vm467_vm0, %v1340_v43  ;;  %v1214_v55 = vmul.f32 %v2704_v48, %v1773_v47 }
 0x175   : > { %1467 = vst.msk [vmem:[%s2331_s30 + $0x300] sm:$0xff] %vm467_vm0, %v1339_v49  ;;  %v1213_v56 = vmul.f32 %v2704_v48, %v1775_v51  ;;  %1784 = vtanh.f32 %v958_v0 }
 0x176   : > { %v1342_v58 = vadd.f32 %v1911_v57, %v1214_v55  ;;  %1786 = vtanh.f32 %v957_v50  ;;  %v791_v29 = vpop.xlane.xlu1 %790  ;;  %v788_v60 = vpop.xlane.xlu0 %787  ;;  %v1921_v55 = vld [vmem:[%s1999_s24 + $0x368] sm:$0xff] }
 0x177   : > { %v1777_v30 = vpop.eup %1776  ;;  %v1341_v9 = vadd.f32 %v1912_v61, %v1213_v56  ;;  %v960_v62 = vadd.f32 %v2286_v52, %v791_v29  ;;  %v959_v53 = vadd.f32 %v2286_v52, %v788_v60  ;;  %v1922_v60 = vld [vmem:[%s1999_s24 + $0x360] sm:$0xff] }
 0x178   : > { %v1779_v10 = vpop.eup %1778  ;;  %1470 = vst.msk [vmem:[%s2331_s30 + $0x318] sm:$0xff] %vm467_vm0, %v1342_v58  ;;  %v1216_v54 = vmul.f32 %v2704_v48, %v1777_v30 }
 0x179   : > { %1469 = vst.msk [vmem:[%s2331_s30 + $0x310] sm:$0xff] %vm467_vm0, %v1341_v9  ;;  %v1215_v63 = vmul.f32 %v2704_v48, %v1779_v10  ;;  %1788 = vtanh.f32 %v960_v62 }
 0x17a   : > { %v1344_v5 = vadd.f32 %v1913_v4, %v1216_v54  ;;  %1790 = vtanh.f32 %v959_v53  ;;  %v797_v6 = vpop.xlane.xlu1 %796  ;;  %v794_v8 = vpop.xlane.xlu0 %793  ;;  %v1923_v54 = vld [vmem:[%s1999_s24 + $0x378] sm:$0xff] }
 0x17b   : > { %v1781_v11 = vpop.eup %1780  ;;  %v1343_v13 = vadd.f32 %v1914_v12, %v1215_v63  ;;  %v962_v14 = vadd.f32 %v2286_v52, %v797_v6  ;;  %v961_v35 = vadd.f32 %v2286_v52, %v794_v8  ;;  %v1924_v8 = vld [vmem:[%s1999_s24 + $0x370] sm:$0xff] }
 0x17c   : > { %v1783_v15 = vpop.eup %1782  ;;  %1472 = vst.msk [vmem:[%s2331_s30 + $0x328] sm:$0xff] %vm467_vm0, %v1344_v5  ;;  %v1218_v36 = vmul.f32 %v2704_v48, %v1781_v11 }
 0x17d   : > { %1471 = vst.msk [vmem:[%s2331_s30 + $0x320] sm:$0xff] %vm467_vm0, %v1343_v13  ;;  %v1217_v16 = vmul.f32 %v2704_v48, %v1783_v15  ;;  %1792 = vtanh.f32 %v962_v14 }
 0x17e   : > { %v1346_v59 = vadd.f32 %v1915_v1, %v1218_v36  ;;  %1794 = vtanh.f32 %v961_v35  ;;  %v803_v19 = vpop.xlane.xlu1 %802  ;;  %v800_v17 = vpop.xlane.xlu0 %799  ;;  %v1925_v36 = vld [vmem:[%s1999_s24 + $0x388] sm:$0xff] }
 0x17f   : > { %v1785_v2 = vpop.eup %1784  ;;  %v1345_v20 = vadd.f32 %v1916_v18, %v1217_v16  ;;  %v964_v21 = vadd.f32 %v2286_v52, %v803_v19  ;;  %v963_v22 = vadd.f32 %v2286_v52, %v800_v17  ;;  %v1926_v17 = vld [vmem:[%s1999_s24 + $0x380] sm:$0xff] }
 0x180   : > { %v1787_v25 = vpop.eup %1786  ;;  %1474 = vst.msk [vmem:[%s2331_s30 + $0x338] sm:$0xff] %vm467_vm0, %v1346_v59  ;;  %v1220_v26 = vmul.f32 %v2704_v48, %v1785_v2 }
 0x181   : > { %1473 = vst.msk [vmem:[%s2331_s30 + $0x330] sm:$0xff] %vm467_vm0, %v1345_v20  ;;  %v1219_v27 = vmul.f32 %v2704_v48, %v1787_v25  ;;  %1796 = vtanh.f32 %v964_v21 }
 0x182   : > { %v1348_v41 = vadd.f32 %v1917_v28, %v1220_v26  ;;  %1798 = vtanh.f32 %v963_v22  ;;  %v809_v31 = vpop.xlane.xlu1 %808  ;;  %v806_v42 = vpop.xlane.xlu0 %805  ;;  %v1927_v26 = vld [vmem:[%s1999_s24 + $0x398] sm:$0xff] }
 0x183   : > { %v1789_v32 = vpop.eup %1788  ;;  %v1347_v34 = vadd.f32 %v1918_v33, %v1219_v27  ;;  %v966_v38 = vadd.f32 %v2286_v52, %v809_v31  ;;  %v965_v39 = vadd.f32 %v2286_v52, %v806_v42  ;;  %v1928_v42 = vld [vmem:[%s1999_s24 + $0x390] sm:$0xff] }
 0x184   : > { %v1791_v23 = vpop.eup %1790  ;;  %1476 = vst.msk [vmem:[%s2331_s30 + $0x348] sm:$0xff] %vm467_vm0, %v1348_v41  ;;  %v1222_v3 = vmul.f32 %v2704_v48, %v1789_v32 }
 0x185   : > { %1475 = vst.msk [vmem:[%s2331_s30 + $0x340] sm:$0xff] %vm467_vm0, %v1347_v34  ;;  %v1221_v24 = vmul.f32 %v2704_v48, %v1791_v23  ;;  %1800 = vtanh.f32 %v966_v38 }
 0x186   : > { %v1350_v7 = vadd.f32 %v1919_v40, %v1222_v3  ;;  %1802 = vtanh.f32 %v965_v39  ;;  %v815_v37 = vpop.xlane.xlu1 %814  ;;  %v812_v43 = vpop.xlane.xlu0 %811  ;;  %v1929_v3 = vld [vmem:[%s1999_s24 + $0x3a8] sm:$0xff] }
 0x187   : > { %v1793_v44 = vpop.eup %1792  ;;  %v1349_v47 = vadd.f32 %v1920_v45, %v1221_v24  ;;  %v968_v46 = vadd.f32 %v2286_v52, %v815_v37  ;;  %v967_v49 = vadd.f32 %v2286_v52, %v812_v43  ;;  %v1930_v43 = vld [vmem:[%s1999_s24 + $0x3a0] sm:$0xff] }
 0x188   : > { %v1795_v0 = vpop.eup %1794  ;;  %1478 = vst.msk [vmem:[%s2331_s30 + $0x358] sm:$0xff] %vm467_vm0, %v1350_v7  ;;  %v1224_v50 = vmul.f32 %v2704_v48, %v1793_v44 }
 0x189   : > { %1477 = vst.msk [vmem:[%s2331_s30 + $0x350] sm:$0xff] %vm467_vm0, %v1349_v47  ;;  %v1223_v51 = vmul.f32 %v2704_v48, %v1795_v0  ;;  %1804 = vtanh.f32 %v968_v46  ;;  %v1931_v0 = vld [vmem:[%s3112_s3] ss:$0 sm:$0xff] }
 0x18a   : > { %v1352_v56 = vadd.f32 %v1921_v55, %v1224_v50  ;;  %1806 = vtanh.f32 %v967_v49  ;;  %v821_v57 = vpop.xlane.xlu1 %820  ;;  %v818_v58 = vpop.xlane.xlu0 %817 }
 0x18b   : > { %v1797_v29 = vpop.eup %1796  ;;  %v1351_v30 = vadd.f32 %v1922_v60, %v1223_v51  ;;  %v970_v61 = vadd.f32 %v2286_v52, %v821_v57  ;;  %v969_v9 = vadd.f32 %v2286_v52, %v818_v58  ;;  %v1932_v51 = vld [vmem:[%s1999_s24 + $0x3b8] sm:$0xff] }
 0x18c   : > { %v1799_v62 = vpop.eup %1798  ;;  %1480 = vst.msk [vmem:[%s2331_s30 + $0x368] sm:$0xff] %vm467_vm0, %v1352_v56  ;;  %v1226_v53 = vmul.f32 %v2704_v48, %v1797_v29  ;;  %v1933_v29 = vld [vmem:[%s1999_s24 + $0x3b0] sm:$0xff] }
 0x18d   : > { %1479 = vst.msk [vmem:[%s2331_s30 + $0x360] sm:$0xff] %vm467_vm0, %v1351_v30  ;;  %v1225_v10 = vmul.f32 %v2704_v48, %v1799_v62  ;;  %1808 = vtanh.f32 %v970_v61 }
 0x18e   : > { %v1354_v63 = vadd.f32 %v1923_v54, %v1226_v53  ;;  %1810 = vtanh.f32 %v969_v9  ;;  %v827_v4 = vpop.xlane.xlu1 %826  ;;  %v824_v5 = vpop.xlane.xlu0 %823  ;;  %v1934_v53 = vld [vmem:[%s1999_s24 + $0x3c8] sm:$0xff] }
 0x18f   : > { %v1801_v6 = vpop.eup %1800  ;;  %v1353_v11 = vadd.f32 %v1924_v8, %v1225_v10  ;;  %v972_v12 = vadd.f32 %v2286_v52, %v827_v4  ;;  %v971_v13 = vadd.f32 %v2286_v52, %v824_v5  ;;  %v1936_v8 = vld [vmem:[%s1999_s24 + $0x3d8] sm:$0xff] }
 0x190   : > { %v1803_v14 = vpop.eup %1802  ;;  %1482 = vst.msk [vmem:[%s2331_s30 + $0x378] sm:$0xff] %vm467_vm0, %v1354_v63  ;;  %v1228_v35 = vmul.f32 %v2704_v48, %v1801_v6  ;;  %v1935_v63 = vld [vmem:[%s1999_s24 + $0x3c0] sm:$0xff] }
 0x191   : > { %1481 = vst.msk [vmem:[%s2331_s30 + $0x370] sm:$0xff] %vm467_vm0, %v1353_v11  ;;  %v1227_v15 = vmul.f32 %v2704_v48, %v1803_v14  ;;  %1812 = vtanh.f32 %v972_v12 }
 0x192   : > { %v1356_v16 = vadd.f32 %v1925_v36, %v1228_v35  ;;  %1814 = vtanh.f32 %v971_v13  ;;  %v833_v1 = vpop.xlane.xlu1 %832  ;;  %v830_v59 = vpop.xlane.xlu0 %829  ;;  %v1937_v13 = vld [vmem:[%s1999_s24 + $0x3d0] sm:$0xff] }
 0x193   : > { %v1805_v19 = vpop.eup %1804  ;;  %v1355_v2 = vadd.f32 %v1926_v17, %v1227_v15  ;;  %v974_v18 = vadd.f32 %v2286_v52, %v833_v1  ;;  %v973_v20 = vadd.f32 %v2286_v52, %v830_v59 }
 0x194   : > { %v1807_v21 = vpop.eup %1806  ;;  %1484 = vst.msk [vmem:[%s2331_s30 + $0x388] sm:$0xff] %vm467_vm0, %v1356_v16  ;;  %v1230_v22 = vmul.f32 %v2704_v48, %v1805_v19  ;;  %v1938_v16 = vld [vmem:[%s1999_s24 + $0x3e8] sm:$0xff]  ;;  %v1939_v19 = vld [vmem:[%s1999_s24 + $0x3e0] sm:$0xff] }
 0x195   : > { %1483 = vst.msk [vmem:[%s2331_s30 + $0x380] sm:$0xff] %vm467_vm0, %v1355_v2  ;;  %v1229_v25 = vmul.f32 %v2704_v48, %v1807_v21  ;;  %1816 = vtanh.f32 %v974_v18  ;;  %v1940_v21 = vld [vmem:[%s1999_s24 + $0x3f8] sm:$0xff] }
 0x196   : > { %v1358_v27 = vadd.f32 %v1927_v26, %v1230_v22  ;;  %1818 = vtanh.f32 %v973_v20  ;;  %v839_v28 = vpop.xlane.xlu1 %838  ;;  %v836_v41 = vpop.xlane.xlu0 %835 }
 0x197   : > { %v1809_v31 = vpop.eup %1808  ;;  %v1357_v32 = vadd.f32 %v1928_v42, %v1229_v25  ;;  %v976_v33 = vadd.f32 %v2286_v52, %v839_v28  ;;  %v975_v34 = vadd.f32 %v2286_v52, %v836_v41  ;;  %v1941_v25 = vld [vmem:[%s1999_s24 + $0x3f0] sm:$0xff] }
 0x198   : > { %v1811_v38 = vpop.eup %1810  ;;  %1486 = vst.msk [vmem:[%s2331_s30 + $0x398] sm:$0xff] %vm467_vm0, %v1358_v27  ;;  %v1232_v39 = vmul.f32 %v2704_v48, %v1809_v31 }
 0x199   : > { %1485 = vst.msk [vmem:[%s2331_s30 + $0x390] sm:$0xff] %vm467_vm0, %v1357_v32  ;;  %v1231_v23 = vmul.f32 %v2704_v48, %v1811_v38  ;;  %1820 = vtanh.f32 %v976_v33 }
 0x19a   : > { %v1360_v24 = vadd.f32 %v1929_v3, %v1232_v39  ;;  %1822 = vtanh.f32 %v975_v34  ;;  %v845_v40 = vpop.xlane.xlu1 %844  ;;  %v842_v7 = vpop.xlane.xlu0 %841 }
 0x19b   : > { %v1813_v37 = vpop.eup %1812  ;;  %v1359_v44 = vadd.f32 %v1930_v43, %v1231_v23  ;;  %v978_v45 = vadd.f32 %v2286_v52, %v845_v40  ;;  %v977_v47 = vadd.f32 %v2286_v52, %v842_v7 }
 0x19c   : > { %v1815_v46 = vpop.eup %1814  ;;  %1488 = vst.msk [vmem:[%s2331_s30 + $0x3a8] sm:$0xff] %vm467_vm0, %v1360_v24  ;;  %v1234_v49 = vmul.f32 %v2704_v48, %v1813_v37 }
 0x19d   : > { %1487 = vst.msk [vmem:[%s2331_s30 + $0x3a0] sm:$0xff] %vm467_vm0, %v1359_v44  ;;  %v1233_v50 = vmul.f32 %v1931_v0, %v1815_v46  ;;  %1824 = vtanh.f32 %v978_v45 }
 0x19e   : > { %v1362_v55 = vadd.f32 %v1932_v51, %v1234_v49  ;;  %1826 = vtanh.f32 %v977_v47  ;;  %v851_v56 = vpop.xlane.xlu1 %850  ;;  %v848_v57 = vpop.xlane.xlu0 %847 }
 0x19f   : > { %v1817_v58 = vpop.eup %1816  ;;  %v1361_v48 = vadd.f32 %v1933_v29, %v1233_v50  ;;  %v980_v60 = vadd.f32 %v2286_v52, %v851_v56  ;;  %v979_v30 = vadd.f32 %v2286_v52, %v848_v57 }
 0x1a0   : > { %v1819_v61 = vpop.eup %1818  ;;  %1490 = vst.msk [vmem:[%s2331_s30 + $0x3b8] sm:$0xff] %vm467_vm0, %v1362_v55  ;;  %v1236_v9 = vmul.f32 %v1931_v0, %v1817_v58 }
 0x1a1   : > { %1489 = vst.msk [vmem:[%s2331_s30 + $0x3b0] sm:$0xff] %vm467_vm0, %v1361_v48  ;;  %v1235_v62 = vmul.f32 %v1931_v0, %v1819_v61  ;;  %1828 = vtanh.f32 %v980_v60 }
 0x1a2   : > { %v1364_v10 = vadd.f32 %v1934_v53, %v1236_v9  ;;  %1830 = vtanh.f32 %v979_v30 }
 0x1a3   : > { %v1821_v54 = vpop.eup %1820  ;;  %v1363_v4 = vadd.f32 %v1935_v63, %v1235_v62 }
 0x1a4   : > { %v1823_v52 = vpop.eup %1822  ;;  %1492 = vst.msk [vmem:[%s2331_s30 + $0x3c8] sm:$0xff] %vm467_vm0, %v1364_v10  ;;  %v1238_v5 = vmul.f32 %v1931_v0, %v1821_v54 }
 0x1a5   : > { %1491 = vst.msk [vmem:[%s2331_s30 + $0x3c0] sm:$0xff] %vm467_vm0, %v1363_v4  ;;  %v1237_v6 = vmul.f32 %v1931_v0, %v1823_v52 }
 0x1a6   : > { %v1366_v11 = vadd.f32 %v1936_v8, %v1238_v5 }
 0x1a7   : > { %v1825_v12 = vpop.eup %1824  ;;  %v1365_v14 = vadd.f32 %v1937_v13, %v1237_v6 }
 0x1a8   : > { %v1827_v35 = vpop.eup %1826  ;;  %1494 = vst.msk [vmem:[%s2331_s30 + $0x3d8] sm:$0xff] %vm467_vm0, %v1366_v11  ;;  %v1240_v15 = vmul.f32 %v1931_v0, %v1825_v12 }
 0x1a9   : > { %1493 = vst.msk [vmem:[%s2331_s30 + $0x3d0] sm:$0xff] %vm467_vm0, %v1365_v14  ;;  %v1239_v36 = vmul.f32 %v1931_v0, %v1827_v35 }
 0x1aa   : > { %v1368_v1 = vadd.f32 %v1938_v16, %v1240_v15 }
 0x1ab   : > { %v1829_v59 = vpop.eup %1828  ;;  %v1367_v17 = vadd.f32 %v1939_v19, %v1239_v36 }
 0x1ac   : > { %v1831_v2 = vpop.eup %1830  ;;  %1496 = vst.msk [vmem:[%s2331_s30 + $0x3e8] sm:$0xff] %vm467_vm0, %v1368_v1  ;;  %v1242_v18 = vmul.f32 %v1931_v0, %v1829_v59 }
 0x1ad   : > { %1495 = vst.msk [vmem:[%s2331_s30 + $0x3e0] sm:$0xff] %vm467_vm0, %v1367_v17  ;;  %v1241_v20 = vmul.f32 %v1931_v0, %v1831_v2 }
 0x1ae   : > { %v1370_v22 = vadd.f32 %v1940_v21, %v1242_v18 }
 0x1af   : > { %v1369_v26 = vadd.f32 %v1941_v25, %v1241_v20 }
 0x1b0   : > { %1498 = vst.msk [vmem:[%s2331_s30 + $0x3f8] sm:$0xff] %vm467_vm0, %v1370_v22 }
 0x1b1   : > { %1497 = vst.msk [vmem:[%s2331_s30 + $0x3f0] sm:$0xff] %vm467_vm0, %v1369_v26 }
 0x1b2 PF: > { %s15_s17 = sadd.s32 1, %s1948_s17  }
 0x1b3   : > { %p12_p4 = scmp.ge.s32.totalorder %s15_s17, 4  }
 0x1b5   :  { %14 = sbr.rel (!%p12_p4) target bundleno = 2 (0x2), region = 66 }

</bundles_post_ra>
